<compile_context>
chip_gen: v5e
topology: v5e:2x2
jax: 0.10.0
libtpu: 0.0.40
codegen_flags: <defaults>
</compile_context>

<pallas_src>
import numpy as np
import jax
import jax.numpy as jnp
from jax import lax
from jax.experimental import pallas as pl
from jax.experimental.pallas import tpu as pltpu


def _sum2d(x):
    """Full reduction of a 2-D value down to shape (1, 1)."""
    return jnp.sum(jnp.sum(x, axis=1, keepdims=True), axis=0, keepdims=True)


def _round_up(x, m):
    return ((int(x) + m - 1) // m) * m


def _make_stats_kernel(D, P, DP_, UP_, NP_, *, tau, w_neg, w_unl, nce_eps, pd_eps):
    """Gridless pass: per-sample distance, multi-positive InfoNCE, ortho Gram."""
    neg_inv_tau = -1.0 / float(tau)
    inv_dd = 1.0 / float(D * D)
    p_real = float(P)

    def kernel(u_nd_ref, p_nd_ref, u_dn_ref, invu_row_ref, sgn_col_ref,
               dist_ref, nce_ref, ortho_ref):
        u_nd = u_nd_ref[...]            # [NP, DP]
        p_nd = p_nd_ref[...]            # [NP, DP]
        u_dn = u_dn_ref[...]            # [DP, NP] (canonical MXU layout for u^T p)
        invu_row = invu_row_ref[...]    # [1, NP] int32, -1 on padded samples
        sgn_col = sgn_col_ref[...]      # [NP, 1] f32 labels in {-1, 0, 1}

        # ---- F.pairwise_distance(u_emb, p_emb) = ||u - p + eps||_2 ----------
        d_lane = (lax.broadcasted_iota(jnp.int32, (1, DP_), 1) < D).astype(jnp.float32)
        diff = u_nd - p_nd + pd_eps
        dist_col = jnp.sqrt(jnp.sum(diff * diff * d_lane, axis=1, keepdims=True))
        dist_ref[...] = dist_col        # [NP, 1]

        # ---- multi-positive InfoNCE, accumulated per user in sample space ---
        pos_col = (sgn_col == 1.0).astype(jnp.float32)
        neg_col = (sgn_col == -1.0).astype(jnp.float32)
        w_col = w_unl + (1.0 - w_unl) * pos_col + (w_neg - w_unl) * neg_col
        we_col = w_col * jnp.exp(dist_col * neg_inv_tau)     # [NP, 1]
        pwe_col = we_col * pos_col                           # [NP, 1]

        # Fuse the four per-user reductions into one MXU pass:
        # ohu [UP, NP] (built in-kernel, never DMA'd) x rhs [NP, 128].
        lane = lax.broadcasted_iota(jnp.int32, (1, 128), 1)
        rhs = (we_col * (lane == 0).astype(jnp.float32)
               + pwe_col * (lane == 1).astype(jnp.float32)
               + pos_col * (lane == 2).astype(jnp.float32)
               + (lane == 3).astype(jnp.float32))            # [NP, 128]
        ohu = (lax.broadcasted_iota(jnp.int32, (UP_, NP_), 0)
               == invu_row).astype(jnp.float32)              # [UP, NP]
        sums = jnp.dot(ohu, rhs, preferred_element_type=jnp.float32)  # [UP, 128]

        def _col(k):
            m = (lane == k).astype(jnp.float32)
            return jnp.sum(sums * m, axis=1, keepdims=True)  # [UP, 1]

        sum_we, sum_pwe, pos_cnt, cnt = _col(0), _col(1), _col(2), _col(3)

        # Non-interacted [U, P] cells have dist=0, label=0 in the reference, so
        # each contributes w_unl * exp(0) = w_unl to the denominator.
        denom = sum_we + w_unl * (p_real - cnt) + nce_eps
        valid = pos_cnt > 0.0
        ratio = jnp.where(valid, sum_pwe / denom, 1.0)
        per_user = -jnp.log(ratio)                           # [UP, 1]
        vcnt = jnp.sum(valid.astype(jnp.float32), axis=0, keepdims=True)
        psum = jnp.sum(per_user, axis=0, keepdims=True)      # (1, 1)
        nce_ref[...] = jnp.where(vcnt > 0.0, psum / jnp.maximum(vcnt, 1.0), 0.0)

        # ---- orthogonality penalty: mean |u_emb^T @ p_emb| on the MXU --------
        g = jnp.dot(u_dn, p_nd, preferred_element_type=jnp.float32)  # [DP, DP]
        ortho_ref[...] = inv_dd * _sum2d(jnp.abs(g))

    return kernel


def _make_hinge_kernel(hinge_margin):
    """Row-tiled pass: pairwise positive ranking (hinge) partial sums."""

    def kernel(dcol_ref, drow_ref, tcol_ref, trow_ref, ucol_ref, urow_ref, out_ref):
        dist_col = dcol_ref[...]        # [TR, 1]
        dist_row = drow_ref[...]        # [1, NP]
        t_col = tcol_ref[...]           # [TR, 1]
        t_row = trow_ref[...]           # [1, NP]
        uid_col = ucol_ref[...]         # [TR, 1] int32 (-1 on padding)
        uid_row = urow_ref[...]         # [1, NP] int32

        # One-sided pair enumeration: each unordered same-user positive pair
        # (t_i != t_j) is counted exactly once, on the side where t_row > t_col
        # (so sign == +1 and no 0.5 factor).  Padding has t == 0 -> excluded.
        # NOTE: the reference hinge's positive criterion is score > 0 (raw t),
        # not the InfoNCE high-threshold label -- kept faithful here.
        mask = ((uid_col == uid_row)
                & (t_row > t_col)
                & (t_col > 0.0)
                & (t_row > 0.0))                              # [TR, NP]
        val = jnp.maximum(dist_col - dist_row + hinge_margin, 0.0)
        partial = _sum2d(jnp.where(mask, val, 0.0))           # (1, 1)
        out_ref[...] = partial + jnp.zeros(out_ref.shape, jnp.float32)

    return kernel


def soft_contrastive_loss(u_emb, p_emb, p_views, t, user_ids, prop_ids,
                          margin=1.0, temp=0.3, lambda_ortho=0.1,
                          low_thresh=0.4, high_thresh=0.7):
    del p_views, margin  # p_views unused; reference hinge uses its own default margin=0.1
    user_ids = np.asarray(user_ids)
    prop_ids = np.asarray(prop_ids)
    t_np = np.asarray(t, dtype=np.float32)
    u_np = np.asarray(u_emb, dtype=np.float32)
    p_np = np.asarray(p_emb, dtype=np.float32)
    N, D = u_np.shape

    # torch.unique(return_inverse=True): host-side glue (data-dependent sizes).
    uniq_u, inv_u = np.unique(user_ids, return_inverse=True)
    uniq_p = np.unique(prop_ids)
    U, P = int(uniq_u.shape[0]), int(uniq_p.shape[0])
    # NOTE: the sample-space formulation assumes each (user, prop) pair occurs
    # once; the reference index-assignment would overwrite duplicates.

    # Bucketed, lane/sublane-aligned padded sizes.
    NP_ = _round_up(max(N, 1), 128)
    DP_ = _round_up(max(D, 1), 128)
    UP_ = _round_up(max(U, 1), 8)

    sgn_t = np.zeros_like(t_np)
    sgn_t[t_np > high_thresh] = 1.0
    sgn_t[t_np < low_thresh] = -1.0

    u_pad = np.zeros((NP_, DP_), np.float32); u_pad[:N, :D] = u_np
    p_pad = np.zeros((NP_, DP_), np.float32); p_pad[:N, :D] = p_np
    u_dn = np.ascontiguousarray(u_pad.T)          # only the LHS Gram layout is duplicated

    invu_pad = np.full((NP_,), -1, np.int32); invu_pad[:N] = inv_u.astype(np.int32)
    t_pad = np.zeros((NP_,), np.float32); t_pad[:N] = t_np
    sgn_pad = np.zeros((NP_,), np.float32); sgn_pad[:N] = sgn_t

    invu_j = jnp.asarray(invu_pad)
    t_j = jnp.asarray(t_pad)

    # TODO(synk): reference calls multi_pos_info_nce(..., t=self.temp) which is a
    # TypeError in torch; we interpret the intent as tau=self.temp.
    stats_kernel = _make_stats_kernel(D, P, DP_, UP_, NP_, tau=temp, w_neg=1.5,
                                      w_unl=0.3, nce_eps=1e-8, pd_eps=1e-6)
    vmem = pl.BlockSpec(memory_space=pltpu.MemorySpace.VMEM)
    dist_col, nce, ortho = pl.pallas_call(
        stats_kernel,
        out_shape=(jax.ShapeDtypeStruct((NP_, 1), jnp.float32),
                   jax.ShapeDtypeStruct((1, 1), jnp.float32),
                   jax.ShapeDtypeStruct((1, 1), jnp.float32)),
        in_specs=[vmem] * 5,
        out_specs=(vmem, vmem, vmem),
        compiler_params=pltpu.CompilerParams(vmem_limit_bytes=48 * 1024 * 1024),
    )(jnp.asarray(u_pad), jnp.asarray(p_pad), jnp.asarray(u_dn),
      invu_j.reshape(1, NP_), jnp.asarray(sgn_pad).reshape(NP_, 1))

    # ---- tiled N x N hinge over row blocks; "parallel" grid (megacore on v7x).
    TR = 256 if NP_ % 256 == 0 else 128
    G = NP_ // TR
    hinge_kernel = _make_hinge_kernel(0.1)        # reference default margin
    col_spec = pl.BlockSpec((TR, 1), lambda r: (r, 0))
    row_spec = pl.BlockSpec((1, NP_), lambda r: (0, 0))
    parts = pl.pallas_call(
        hinge_kernel,
        out_shape=jax.ShapeDtypeStruct((G, 8, 128), jnp.float32),
        grid=(G,),
        in_specs=[col_spec, row_spec, col_spec, row_spec, col_spec, row_spec],
        out_specs=pl.BlockSpec((1, 8, 128), lambda r: (r, 0, 0)),
        compiler_params=pltpu.CompilerParams(
            dimension_semantics=("parallel",),
            vmem_limit_bytes=48 * 1024 * 1024),
    )(dist_col, dist_col.reshape(1, NP_),
      t_j.reshape(NP_, 1), t_j.reshape(1, NP_),
      invu_j.reshape(NP_, 1), invu_j.reshape(1, NP_))

    hinge = jnp.sum(parts[:, 0, 0]) / float(U)
    return nce[0, 0] + hinge + lambda_ortho * ortho[0, 0]


if __name__ == "__main__":
    key = jax.random.PRNGKey(0)
    k1, k2, k3 = jax.random.split(key, 3)
    N, D = 8, 32
    u_emb = jax.random.normal(k1, (N, D), jnp.float32)
    p_emb = jax.random.normal(k2, (N, D), jnp.float32)
    t = jax.random.uniform(k3, (N,), jnp.float32, 0.05, 0.95)
    p_views = jnp.zeros((N,), jnp.float32)  # unused by the forward pass
    user_ids = jnp.array([0, 0, 1, 1, 2, 2, 3, 3], jnp.int32)
    prop_ids = jnp.array([10, 11, 12, 13, 14, 10, 11, 15], jnp.int32)

    loss = soft_contrastive_loss(u_emb, p_emb, p_views, t, user_ids, prop_ids)
    loss = jax.block_until_ready(loss)
    assert jnp.isfinite(loss)
    print("KERNEL_OK")
</pallas_src>

<mosaic_0001>
module attributes {stable_mosaic.version = 11 : i64} {
  func.func @kernel(%arg0: memref<128x128xf32, #tpu.memory_space<vmem>>, %arg1: memref<128x128xf32, #tpu.memory_space<vmem>>, %arg2: memref<128x128xf32, #tpu.memory_space<vmem>>, %arg3: memref<1x128xi32, #tpu.memory_space<vmem>>, %arg4: memref<128x1xf32, #tpu.memory_space<vmem>>, %arg5: memref<128x1xf32, #tpu.memory_space<vmem>>, %arg6: memref<1x1xf32, #tpu.memory_space<vmem>>, %arg7: memref<1x1xf32, #tpu.memory_space<vmem>>) attributes {dimension_semantics = [], scalar_prefetch = 0 : i64, scratch_operands = 0 : i64, tpu.core_type = #tpu.core_type<tc>} {
    %c0 = arith.constant 0 : index
    %c0_0 = arith.constant 0 : index
    %0 = vector.load %arg0[%c0, %c0_0] : memref<128x128xf32, #tpu.memory_space<vmem>>, vector<128x128xf32>
    %c0_1 = arith.constant 0 : index
    %c0_2 = arith.constant 0 : index
    %1 = vector.load %arg1[%c0_1, %c0_2] : memref<128x128xf32, #tpu.memory_space<vmem>>, vector<128x128xf32>
    %c0_3 = arith.constant 0 : index
    %c0_4 = arith.constant 0 : index
    %2 = vector.load %arg2[%c0_3, %c0_4] : memref<128x128xf32, #tpu.memory_space<vmem>>, vector<128x128xf32>
    %c0_5 = arith.constant 0 : index
    %c0_6 = arith.constant 0 : index
    %3 = vector.load %arg3[%c0_5, %c0_6] : memref<1x128xi32, #tpu.memory_space<vmem>>, vector<1x128xi32>
    %c0_7 = arith.constant 0 : index
    %c0_8 = arith.constant 0 : index
    %4 = vector.load %arg4[%c0_7, %c0_8] : memref<128x1xf32, #tpu.memory_space<vmem>>, vector<128x1xf32>
    %5 = tpu.iota {dimensions = array<i32: 1>} : vector<1x128xi32>
    %c32_i32 = arith.constant 32 : i32
    %6 = vector.broadcast %c32_i32 : i32 to vector<1x128xi32>
    %7 = arith.cmpi slt, %5, %6 : vector<1x128xi32>
    %8 = arith.extui %7 : vector<1x128xi1> to vector<1x128xi32>
    %9 = arith.sitofp %8 : vector<1x128xi32> to vector<1x128xf32>
    %10 = arith.subf %0, %1 : vector<128x128xf32>
    %cst = arith.constant 9.99999997E-7 : f32
    %11 = vector.broadcast %cst : f32 to vector<128x128xf32>
    %12 = arith.addf %10, %11 : vector<128x128xf32>
    %13 = arith.mulf %12, %12 : vector<128x128xf32>
    %14 = vector.broadcast %9 : vector<1x128xf32> to vector<128x128xf32>
    %15 = arith.mulf %13, %14 : vector<128x128xf32>
    %cst_9 = arith.constant dense<0.000000e+00> : vector<128xf32>
    %16 = vector.multi_reduction <add>, %15, %cst_9 [1] : vector<128x128xf32> to vector<128xf32>
    %17 = vector.shape_cast %16 : vector<128xf32> to vector<128x1xf32>
    %18 = math.sqrt %17 : vector<128x1xf32>
    %c0_10 = arith.constant 0 : index
    %c0_11 = arith.constant 0 : index
    %19 = vector.load %arg5[%c0_10, %c0_11] : memref<128x1xf32, #tpu.memory_space<vmem>>, vector<128x1xf32>
    tpu.vector_store %arg5[%c0_10, %c0_11], %18 {strides = array<i32>} : memref<128x1xf32, #tpu.memory_space<vmem>>, vector<128x1xf32>,
    %cst_12 = arith.constant 1.000000e+00 : f32
    %20 = vector.broadcast %cst_12 : f32 to vector<128x1xf32>
    %21 = arith.cmpf oeq, %4, %20 : vector<128x1xf32>
    %22 = arith.extui %21 : vector<128x1xi1> to vector<128x1xi32>
    %23 = arith.sitofp %22 : vector<128x1xi32> to vector<128x1xf32>
    %cst_13 = arith.constant -1.000000e+00 : f32
    %24 = vector.broadcast %cst_13 : f32 to vector<128x1xf32>
    %25 = arith.cmpf oeq, %4, %24 : vector<128x1xf32>
    %26 = arith.extui %25 : vector<128x1xi1> to vector<128x1xi32>
    %27 = arith.sitofp %26 : vector<128x1xi32> to vector<128x1xf32>
    %cst_14 = arith.constant 0.699999988 : f32
    %28 = vector.broadcast %cst_14 : f32 to vector<128x1xf32>
    %29 = arith.mulf %28, %23 : vector<128x1xf32>
    %cst_15 = arith.constant 3.000000e-01 : f32
    %30 = vector.broadcast %cst_15 : f32 to vector<128x1xf32>
    %31 = arith.addf %30, %29 : vector<128x1xf32>
    %cst_16 = arith.constant 1.200000e+00 : f32
    %32 = vector.broadcast %cst_16 : f32 to vector<128x1xf32>
    %33 = arith.mulf %32, %27 : vector<128x1xf32>
    %34 = arith.addf %31, %33 : vector<128x1xf32>
    %cst_17 = arith.constant -3.33333325 : f32
    %35 = vector.broadcast %cst_17 : f32 to vector<128x1xf32>
    %36 = arith.mulf %18, %35 : vector<128x1xf32>
    %37 = math.exp %36 : vector<128x1xf32>
    %38 = arith.mulf %34, %37 : vector<128x1xf32>
    %39 = arith.mulf %38, %23 : vector<128x1xf32>
    %40 = tpu.iota {dimensions = array<i32: 1>} : vector<1x128xi32>
    %c0_i32 = arith.constant 0 : i32
    %41 = vector.broadcast %c0_i32 : i32 to vector<1x128xi32>
    %42 = arith.cmpi eq, %40, %41 : vector<1x128xi32>
    %43 = arith.extui %42 : vector<1x128xi1> to vector<1x128xi32>
    %44 = arith.sitofp %43 : vector<1x128xi32> to vector<1x128xf32>
    %45 = vector.broadcast %38 : vector<128x1xf32> to vector<128x128xf32>
    %46 = vector.broadcast %44 : vector<1x128xf32> to vector<128x128xf32>
    %47 = arith.mulf %45, %46 : vector<128x128xf32>
    %c1_i32 = arith.constant 1 : i32
    %48 = vector.broadcast %c1_i32 : i32 to vector<1x128xi32>
    %49 = arith.cmpi eq, %40, %48 : vector<1x128xi32>
    %50 = arith.extui %49 : vector<1x128xi1> to vector<1x128xi32>
    %51 = arith.sitofp %50 : vector<1x128xi32> to vector<1x128xf32>
    %52 = vector.broadcast %39 : vector<128x1xf32> to vector<128x128xf32>
    %53 = vector.broadcast %51 : vector<1x128xf32> to vector<128x128xf32>
    %54 = arith.mulf %52, %53 : vector<128x128xf32>
    %55 = arith.addf %47, %54 : vector<128x128xf32>
    %c2_i32 = arith.constant 2 : i32
    %56 = vector.broadcast %c2_i32 : i32 to vector<1x128xi32>
    %57 = arith.cmpi eq, %40, %56 : vector<1x128xi32>
    %58 = arith.extui %57 : vector<1x128xi1> to vector<1x128xi32>
    %59 = arith.sitofp %58 : vector<1x128xi32> to vector<1x128xf32>
    %60 = vector.broadcast %23 : vector<128x1xf32> to vector<128x128xf32>
    %61 = vector.broadcast %59 : vector<1x128xf32> to vector<128x128xf32>
    %62 = arith.mulf %60, %61 : vector<128x128xf32>
    %63 = arith.addf %55, %62 : vector<128x128xf32>
    %c3_i32 = arith.constant 3 : i32
    %64 = vector.broadcast %c3_i32 : i32 to vector<1x128xi32>
    %65 = arith.cmpi eq, %40, %64 : vector<1x128xi32>
    %66 = arith.extui %65 : vector<1x128xi1> to vector<1x128xi32>
    %67 = arith.sitofp %66 : vector<1x128xi32> to vector<1x128xf32>
    %68 = vector.broadcast %67 : vector<1x128xf32> to vector<128x128xf32>
    %69 = arith.addf %63, %68 : vector<128x128xf32>
    %70 = tpu.iota {dimensions = array<i32: 0>} : vector<8x128xi32>
    %71 = vector.broadcast %3 : vector<1x128xi32> to vector<8x128xi32>
    %72 = arith.cmpi eq, %70, %71 : vector<8x128xi32>
    %73 = arith.extui %72 : vector<8x128xi1> to vector<8x128xi32>
    %74 = arith.sitofp %73 : vector<8x128xi32> to vector<8x128xf32>
    %cst_18 = arith.constant dense<0.000000e+00> : vector<8x128xf32>
    %75 = tpu.matmul %74, %69, %cst_18 {dimension_numbers = #tpu.dot_dimension_numbers<[1], [0], [0], [1], [0, 0, 1, 1], [], []>} : vector<8x128xf32>, vector<128x128xf32>, vector<8x128xf32> -> vector<8x128xf32>
    %c0_i32_19 = arith.constant 0 : i32
    %76 = vector.broadcast %c0_i32_19 : i32 to vector<1x128xi32>
    %77 = arith.cmpi eq, %40, %76 : vector<1x128xi32>
    %78 = arith.extui %77 : vector<1x128xi1> to vector<1x128xi32>
    %79 = arith.sitofp %78 : vector<1x128xi32> to vector<1x128xf32>
    %80 = vector.broadcast %79 : vector<1x128xf32> to vector<8x128xf32>
    %81 = arith.mulf %75, %80 : vector<8x128xf32>
    %cst_20 = arith.constant dense<0.000000e+00> : vector<8xf32>
    %82 = vector.multi_reduction <add>, %81, %cst_20 [1] : vector<8x128xf32> to vector<8xf32>
    %83 = vector.shape_cast %82 : vector<8xf32> to vector<8x1xf32>
    %c1_i32_21 = arith.constant 1 : i32
    %84 = vector.broadcast %c1_i32_21 : i32 to vector<1x128xi32>
    %85 = arith.cmpi eq, %40, %84 : vector<1x128xi32>
    %86 = arith.extui %85 : vector<1x128xi1> to vector<1x128xi32>
    %87 = arith.sitofp %86 : vector<1x128xi32> to vector<1x128xf32>
    %88 = vector.broadcast %87 : vector<1x128xf32> to vector<8x128xf32>
    %89 = arith.mulf %75, %88 : vector<8x128xf32>
    %cst_22 = arith.constant dense<0.000000e+00> : vector<8xf32>
    %90 = vector.multi_reduction <add>, %89, %cst_22 [1] : vector<8x128xf32> to vector<8xf32>
    %91 = vector.shape_cast %90 : vector<8xf32> to vector<8x1xf32>
    %c2_i32_23 = arith.constant 2 : i32
    %92 = vector.broadcast %c2_i32_23 : i32 to vector<1x128xi32>
    %93 = arith.cmpi eq, %40, %92 : vector<1x128xi32>
    %94 = arith.extui %93 : vector<1x128xi1> to vector<1x128xi32>
    %95 = arith.sitofp %94 : vector<1x128xi32> to vector<1x128xf32>
    %96 = vector.broadcast %95 : vector<1x128xf32> to vector<8x128xf32>
    %97 = arith.mulf %75, %96 : vector<8x128xf32>
    %cst_24 = arith.constant dense<0.000000e+00> : vector<8xf32>
    %98 = vector.multi_reduction <add>, %97, %cst_24 [1] : vector<8x128xf32> to vector<8xf32>
    %99 = vector.shape_cast %98 : vector<8xf32> to vector<8x1xf32>
    %c3_i32_25 = arith.constant 3 : i32
    %100 = vector.broadcast %c3_i32_25 : i32 to vector<1x128xi32>
    %101 = arith.cmpi eq, %40, %100 : vector<1x128xi32>
    %102 = arith.extui %101 : vector<1x128xi1> to vector<1x128xi32>
    %103 = arith.sitofp %102 : vector<1x128xi32> to vector<1x128xf32>
    %104 = vector.broadcast %103 : vector<1x128xf32> to vector<8x128xf32>
    %105 = arith.mulf %75, %104 : vector<8x128xf32>
    %cst_26 = arith.constant dense<0.000000e+00> : vector<8xf32>
    %106 = vector.multi_reduction <add>, %105, %cst_26 [1] : vector<8x128xf32> to vector<8xf32>
    %107 = vector.shape_cast %106 : vector<8xf32> to vector<8x1xf32>
    %cst_27 = arith.constant 6.000000e+00 : f32
    %108 = vector.broadcast %cst_27 : f32 to vector<8x1xf32>
    %109 = arith.subf %108, %107 : vector<8x1xf32>
    %cst_28 = arith.constant 3.000000e-01 : f32
    %110 = vector.broadcast %cst_28 : f32 to vector<8x1xf32>
    %111 = arith.mulf %110, %109 : vector<8x1xf32>
    %112 = arith.addf %83, %111 : vector<8x1xf32>
    %cst_29 = arith.constant 9.99999993E-9 : f32
    %113 = vector.broadcast %cst_29 : f32 to vector<8x1xf32>
    %114 = arith.addf %112, %113 : vector<8x1xf32>
    %cst_30 = arith.constant 0.000000e+00 : f32
    %115 = vector.broadcast %cst_30 : f32 to vector<8x1xf32>
    %116 = arith.cmpf ogt, %99, %115 : vector<8x1xf32>
    %117 = arith.divf %91, %114 : vector<8x1xf32>
    %cst_31 = arith.constant 1.000000e+00 : f32
    %118 = vector.broadcast %cst_31 : f32 to vector<8x1xf32>
    %119 = arith.select %116, %117, %118 : vector<8x1xi1>, vector<8x1xf32>
    %120 = math.log %119 : vector<8x1xf32>
    %cst_32 = arith.constant 0.000000e+00 : f32
    %121 = vector.broadcast %cst_32 : f32 to vector<8x1xf32>
    %122 = arith.subf %121, %120 : vector<8x1xf32>
    %123 = arith.extui %116 : vector<8x1xi1> to vector<8x1xi32>
    %124 = arith.sitofp %123 : vector<8x1xi32> to vector<8x1xf32>
    %cst_33 = arith.constant dense<0.000000e+00> : vector<1xf32>
    %125 = vector.multi_reduction <add>, %124, %cst_33 [0] : vector<8x1xf32> to vector<1xf32>
    %126 = vector.shape_cast %125 : vector<1xf32> to vector<1x1xf32>
    %cst_34 = arith.constant dense<0.000000e+00> : vector<1xf32>
    %127 = vector.multi_reduction <add>, %122, %cst_34 [0] : vector<8x1xf32> to vector<1xf32>
    %128 = vector.shape_cast %127 : vector<1xf32> to vector<1x1xf32>
    %cst_35 = arith.constant 0.000000e+00 : f32
    %129 = vector.broadcast %cst_35 : f32 to vector<1x1xf32>
    %130 = arith.cmpf ogt, %126, %129 : vector<1x1xf32>
    %cst_36 = arith.constant 1.000000e+00 : f32
    %131 = vector.broadcast %cst_36 : f32 to vector<1x1xf32>
    %132 = arith.maximumf %126, %131 : vector<1x1xf32>
    %133 = arith.divf %128, %132 : vector<1x1xf32>
    %cst_37 = arith.constant 0.000000e+00 : f32
    %134 = vector.broadcast %cst_37 : f32 to vector<1x1xf32>
    %135 = arith.select %130, %133, %134 : vector<1x1xi1>, vector<1x1xf32>
    %c0_38 = arith.constant 0 : index
    %c0_39 = arith.constant 0 : index
    %136 = vector.load %arg6[%c0_38, %c0_39] : memref<1x1xf32, #tpu.memory_space<vmem>>, vector<1x1xf32>
    tpu.vector_store %arg6[%c0_38, %c0_39], %135 {strides = array<i32>} : memref<1x1xf32, #tpu.memory_space<vmem>>, vector<1x1xf32>,
    %cst_40 = arith.constant dense<0.000000e+00> : vector<128x128xf32>
    %137 = tpu.matmul %2, %1, %cst_40 {dimension_numbers = #tpu.dot_dimension_numbers<[1], [0], [0], [1], [0, 0, 1, 1], [], []>} : vector<128x128xf32>, vector<128x128xf32>, vector<128x128xf32> -> vector<128x128xf32>
    %138 = math.absf %137 : vector<128x128xf32>
    %cst_41 = arith.constant dense<0.000000e+00> : vector<128xf32>
    %139 = vector.multi_reduction <add>, %138, %cst_41 [1] : vector<128x128xf32> to vector<128xf32>
    %140 = vector.shape_cast %139 : vector<128xf32> to vector<128x1xf32>
    %cst_42 = arith.constant dense<0.000000e+00> : vector<1xf32>
    %141 = vector.multi_reduction <add>, %140, %cst_42 [0] : vector<128x1xf32> to vector<1xf32>
    %142 = vector.shape_cast %141 : vector<1xf32> to vector<1x1xf32>
    %cst_43 = arith.constant 9.765625E-4 : f32
    %143 = vector.broadcast %cst_43 : f32 to vector<1x1xf32>
    %144 = arith.mulf %143, %142 : vector<1x1xf32>
    %c0_44 = arith.constant 0 : index
    %c0_45 = arith.constant 0 : index
    %145 = vector.load %arg7[%c0_44, %c0_45] : memref<1x1xf32, #tpu.memory_space<vmem>>, vector<1x1xf32>
    tpu.vector_store %arg7[%c0_44, %c0_45], %144 {strides = array<i32>} : memref<1x1xf32, #tpu.memory_space<vmem>>, vector<1x1xf32>,
    return
  }
}

</mosaic_0001>

<bundles_post_ra>
// kernel: tpu_custom_call.1
= control target key start
LH: loop header
LB: loop body
LE: loop exit
PB: predicated region body
PF: predicated region fallthrough
CT: control target
= control target key end

     0   :  { %13 = vsyncpa [#allocation3], 0  ;;  %s2551_s0 = inlined_call_operand.vmem [shape: f32[128,128], index: 0, kind: input, shape index: {}]   ;;  %s2552_s1 = inlined_call_operand.hbm [shape: f32[128,128], index: 1, kind: input, shape index: {}]   ;;  %s2553_s2 = inlined_call_operand.hbm [shape: f32[128,128], index: 2, kind: input, shape index: {}]   ;;  %s2554_s3 = inlined_call_operand.vmem [shape: s32[1,128], index: 3, kind: input, shape index: {}]   ;;  %s2555_s4 = inlined_call_operand.vmem [shape: f32[128,1], index: 4, kind: input, shape index: {}]   ;;  %s2556_s5 = inlined_call_operand.vmem [shape: f32[128,1], index: 5, kind: output, shape index: {0}]   ;;  %s2557_s6 = inlined_call_operand.hbm [shape: f32[1,1], index: 6, kind: output, shape index: {1}]   ;;  %s2558_s7 = inlined_call_operand.hbm [shape: f32[1,1], index: 7, kind: output, shape index: {2}]  }
   0x1   :  { %14 = vsyncpa [#allocation6], 0 }
   0x2   :  { %15 = vsyncpa [#allocation4], 0 }
   0x3   :  { %16 = vsyncpa [#allocation9], 0  ;;  %s23_s26 = sshll.u32 %s2552_s1, 4  ;;  %s1621_s27 = smov [#allocation2]   ;;  %s24_s26 = int_to_ptr.hbm [resolvable:$true] %s23_s26 }
   0x4   :  { %s25_s28 = sshll.u32 %s1621_s27, 4  ;;  %s36_s8 = sshll.u32 %s2553_s2, 4  ;;  %s26_s28 = int_to_ptr.vmem [resolvable:$true] %s25_s28  ;;  %s37_s8 = int_to_ptr.hbm [resolvable:$true] %s36_s8 }
   0x5   :  { %s1622_s9 = smov 128   ;;  %s1623_s10 = smov 8  }
   0x6   :  { %31 = dma.hbm_to_vmem [thread:$0]  %s24_s26, 2048, %s26_s28, [#allocation3], %s1622_s9, %s1622_s9, %s1623_s10  }
   0x7   :  { %s1624_s11 = smov [#allocation5]  }
   0x8   :  { %s38_s12 = sshll.u32 %s1624_s11, 4  ;;  %s39_s12 = int_to_ptr.vmem [resolvable:$true] %s38_s12 }
   0x9   :  { %44 = dma.hbm_to_vmem [thread:$0]  %s37_s8, 2048, %s39_s12, [#allocation6], %s1622_s9, %s1622_s9, %s1623_s10  }
   0xa   :  { %1613 = dma.done.wait [#allocation3], 2048  }
   0xb   :  { %1614 = vsyncadd [#allocation3], 4294965248 }
   0xc   :  { %1615 = dma.done.wait [#allocation6], 2048  }
   0xd   :  { %1616 = vsyncadd [#allocation6], 4294965248  ;;  %v2559_v0 = vlaneseq  ;;  %v61_v2 = vld [vmem:[%s2551_s0 + $0x20] sm:$0xff]  ;;  %v59_v4 = vld [vmem:[%s2551_s0 + $0x10] sm:$0xff]  ;;  %v2560_v14 = vmov 0.0   ;;  %s1261_s9 = sshll.u32 %s2557_s6, 4  ;;  %s1262_s9 = int_to_ptr.hbm [resolvable:$true] %s1261_s9 }
   0xe   :  { %v1682_v3 = vld [vmem:[#allocation2 + $0x20] sm:$0xff]  ;;  %v1689_v6 = vld [vmem:[#allocation2 + $0x10] sm:$0xff]  ;;  %v62_v11 = vld [vmem:[%s2551_s0 + $0x28] sm:$0xff]  ;;  %s1629_s10 = smov [#allocation8]   ;;  %s1272_s1 = sshll.u32 %s2558_s7, 4  ;;  %s1273_s1 = int_to_ptr.hbm [resolvable:$true] %s1272_s1 }
   0xf   :  { %v1677_v1 = vand.u32 127, %v2559_v0  ;;  %v131_v5 = vsub.f32 %v61_v2, %v1682_v3  ;;  %v57_v7 = vld [vmem:[%s2551_s0] sm:$0xff]  ;;  %v129_v9 = vsub.f32 %v59_v4, %v1689_v6  ;;  %v1701_v12 = vld [vmem:[#allocation2 + $0x28] sm:$0xff]  ;;  %v60_v13 = vld [vmem:[%s2551_s0 + $0x18] sm:$0xff]  ;;  %s1270_s11 = sshll.u32 %s1629_s10, 4  ;;  %s1271_s11 = int_to_ptr.vmem [resolvable:$true] %s1270_s11 }
  0x10   :  { %v1694_v8 = vld [vmem:[#allocation2] sm:$0xff]  ;;  %v132_v17 = vsub.f32 %v62_v11, %v1701_v12  ;;  %v1710_v18 = vld [vmem:[#allocation2 + $0x18] sm:$0xff]  ;;  %v58_v19 = vld [vmem:[%s2551_s0 + $0x8] sm:$0xff] }
  0x11   :  { %2574 = vst [vmem:[#allocation14_spill] sm:$0xff] %v1677_v1  ;;  %vm124_vm0 = vcmp.lt.s32.totalorder %v1677_v1, 32  ;;  %v127_v10 = vsub.f32 %v57_v7, %v1694_v8  ;;  %v147_v16 = vadd.f32 1e-06, %v131_v5  ;;  %v1715_v20 = vld [vmem:[#allocation2 + $0x8] sm:$0xff]  ;;  %v130_v23 = vsub.f32 %v60_v13, %v1710_v18  ;;  %v65_v27 = vld [vmem:[%s2551_s0 + $0x40] sm:$0xff] }
  0x12   :  { %v1707_v15 = vsel %vm124_vm0, 1.0, %v2560_v14  ;;  %v145_v21 = vadd.f32 1e-06, %v129_v9  ;;  %v128_v24 = vsub.f32 %v58_v19, %v1715_v20  ;;  %v148_v26 = vadd.f32 1e-06, %v132_v17  ;;  %v1722_v28 = vld [vmem:[#allocation2 + $0x40] sm:$0xff] }
  0x13   :  { %v143_v22 = vadd.f32 1e-06, %v127_v10  ;;  %v163_v25 = vmul.f32 %v147_v16, %v147_v16  ;;  %v146_v31 = vadd.f32 1e-06, %v130_v23  ;;  %v64_v33 = vld [vmem:[%s2551_s0 + $0x38] sm:$0xff]  ;;  %v63_v36 = vld [vmem:[%s2551_s0 + $0x30] sm:$0xff]  ;;  %v135_v41 = vsub.f32 %v65_v27, %v1722_v28 }
  0x14   :  { %v161_v29 = vmul.f32 %v145_v21, %v145_v21  ;;  %v144_v32 = vadd.f32 1e-06, %v128_v24  ;;  %v1727_v34 = vld [vmem:[#allocation2 + $0x38] sm:$0xff]  ;;  %v1733_v37 = vld [vmem:[#allocation2 + $0x30] sm:$0xff]  ;;  %v164_v40 = vmul.f32 %v148_v26, %v148_v26  ;;  %v1758_v57 = vld [vmem:[#allocation2 + $0x68] sm:$0xff]  ;;  %vm415_vm0 = vcmask 7168  }
  0x15   :  { %v159_v30 = vmul.f32 %v143_v22, %v143_v22  ;;  %v179_v35 = vmul.f32 %v1707_v15, %v163_v25  ;;  %v134_v42 = vsub.f32 %v64_v33, %v1727_v34  ;;  %v162_v43 = vmul.f32 %v146_v31, %v146_v31  ;;  %v1740_v46 = vld [vmem:[#allocation2 + $0x78] sm:$0xff]  ;;  %v1744_v47 = vld [vmem:[#allocation2 + $0x70] sm:$0xff]  ;;  %v66_v59 = vld [vmem:[%s2551_s0 + $0x48] sm:$0xff] }
  0x16   :  { %v177_v38 = vmul.f32 %v1707_v15, %v161_v29  ;;  %v160_v44 = vmul.f32 %v144_v32, %v144_v32  ;;  %v133_v45 = vsub.f32 %v63_v36, %v1733_v37  ;;  %1330 = vmatpush.msra.mxu1 %v1740_v46  ;;  %1331 = vmatpush.msra.mxu2 %v1740_v46  ;;  %v151_v49 = vadd.f32 1e-06, %v135_v41  ;;  %v68_v51 = vld [vmem:[%s2551_s0 + $0x58] sm:$0xff]  ;;  %v67_v56 = vld [vmem:[%s2551_s0 + $0x50] sm:$0xff]  ;;  %v82_v60 = vld [vmem:[#allocation2 + $0x48] sm:$0xff] }
  0x17   :  { %v175_v39 = vmul.f32 %v1707_v15, %v159_v30  ;;  %199 = vadd.xlane.f32.xlu2 %v179_v35  ;;  %1332 = vmatpush.msra.mxu3 %v1740_v46  ;;  %v180_v48 = vmul.f32 %v1707_v15, %v164_v40  ;;  %v150_v50 = vadd.f32 1e-06, %v134_v42  ;;  %v178_v52 = vmul.f32 %v1707_v15, %v162_v43  ;;  %v84_v55 = vld [vmem:[#allocation2 + $0x58] sm:$0xff]  ;;  %v83_v58 = vld [vmem:[#allocation2 + $0x50] sm:$0xff]  ;;  %v85_v61 = vld [vmem:[#allocation2 + $0x60] sm:$0xff] }
  0x18   :  { %195 = vadd.xlane.f32.xlu1 %v177_v38  ;;  %1333 = vmatpush.msra.mxu1 %v1744_v47  ;;  %v176_v53 = vmul.f32 %v1707_v15, %v160_v44  ;;  %v149_v54 = vadd.f32 1e-06, %v133_v45  ;;  %v167_v62 = vmul.f32 %v151_v49, %v151_v49  ;;  %v138_v2 = vsub.f32 %v68_v51, %v84_v55  ;;  %v71_v19 = vld [vmem:[%s2551_s0 + $0x70] sm:$0xff]  ;;  %v72_v21 = vld [vmem:[%s2551_s0 + $0x78] sm:$0xff]  ;;  %v69_v22 = vld [vmem:[%s2551_s0 + $0x60] sm:$0xff] }
  0x19   :  { %191 = vadd.xlane.f32.xlu0 %v175_v39  ;;  %1334 = vmatpush.msra.mxu2 %v1744_v47  ;;  %v166_v63 = vmul.f32 %v150_v50, %v150_v50  ;;  %v137_v5 = vsub.f32 %v67_v56, %v83_v58  ;;  %v136_v7 = vsub.f32 %v66_v59, %v82_v60  ;;  %v70_v38 = vld [vmem:[%s2551_s0 + $0x68] sm:$0xff]  ;;  %v1842_v45 = vld [vmem:[%s2555_s4 + $0x40] sm:$0xff]  ;;  %v1862_v50 = vld [vmem:[%s2555_s4 + $0x70] sm:$0xff] }
  0x1a   :  { %1335 = vmatpush.msra.mxu3 %v1744_v47  ;;  %1336 = vmatpush.msra.mxu1 %v1758_v57  ;;  %v165_v4 = vmul.f32 %v149_v54, %v149_v54  ;;  %v183_v9 = vmul.f32 %v1707_v15, %v167_v62  ;;  %v154_v10 = vadd.f32 1e-06, %v138_v2  ;;  %v141_v24 = vsub.f32 %v71_v19, %v1744_v47  ;;  %v1867_v51 = vld [vmem:[%s2555_s4 + $0x78] sm:$0xff]  ;;  %v1914_v2 = vld [vmem:[%s2555_s4 + $0x60] sm:$0xff] }
  0x1b   :  { %1337 = vmatpush.msra.mxu2 %v1758_v57  ;;  %v182_v11 = vmul.f32 %v1707_v15, %v166_v63  ;;  %v153_v16 = vadd.f32 1e-06, %v137_v5  ;;  %v152_v17 = vadd.f32 1e-06, %v136_v7  ;;  %v142_v25 = vsub.f32 %v72_v21, %v1740_v46  ;;  %v1847_v46 = vld [vmem:[%s2555_s4 + $0x48] sm:$0xff]  ;;  %v108_v63 = vld [vmem:[%s2555_s4 + $0x10] sm:$0xff] }
  0x1c   :  { %1338 = vmatpush.msra.mxu3 %v1758_v57  ;;  %1339 = vmatpush.msra.mxu1 %v85_v61  ;;  %v181_v13 = vmul.f32 %v1707_v15, %v165_v4  ;;  %v170_v23 = vmul.f32 %v154_v10, %v154_v10  ;;  %v139_v29 = vsub.f32 %v69_v22, %v85_v61  ;;  %v157_v31 = vadd.f32 1e-06, %v141_v24  ;;  %v1919_v4 = vld [vmem:[%s2555_s4 + $0x68] sm:$0xff] }
  0x1d   :  { %1340 = vmatpush.msra.mxu2 %v85_v61  ;;  %v169_v26 = vmul.f32 %v153_v16, %v153_v16  ;;  %v168_v27 = vmul.f32 %v152_v17, %v152_v17  ;;  %v158_v35 = vadd.f32 1e-06, %v142_v25  ;;  %vm440_vm3 = vcmp.eq.f32.partialorder %v1842_v45, 1.0 }
  0x1e   :  { %1342 = vmatpush.msra.mxu1 %v84_v55  ;;  %1341 = vmatpush.msra.mxu3 %v85_v61  ;;  %v186_v30 = vmul.f32 %v1707_v15, %v170_v23  ;;  %v155_v36 = vadd.f32 1e-06, %v139_v29  ;;  %v173_v39 = vmul.f32 %v157_v31, %v157_v31  ;;  %vm441_vm4 = vcmp.eq.f32.partialorder %v1847_v46, 1.0  ;;  %v110_v31 = vld [vmem:[%s2555_s4 + $0x20] sm:$0xff] }
  0x1f   :  { %201 = vadd.xlane.f32.xlu2 %v180_v48  ;;  %1343 = vmatpush.msra.mxu2 %v84_v55  ;;  %v185_v32 = vmul.f32 %v1707_v15, %v169_v26  ;;  %v184_v33 = vmul.f32 %v1707_v15, %v168_v27  ;;  %v174_v40 = vmul.f32 %v158_v35, %v158_v35  ;;  %v1852_v47 = vsel %vm440_vm3, 1.0, %v2560_v14 }
  0x20   :  { %197 = vadd.xlane.f32.xlu1 %v178_v52  ;;  %1345 = vmatpush.msra.mxu1 %v83_v58  ;;  %v171_v41 = vmul.f32 %v155_v36, %v155_v36  ;;  %v189_v42 = vmul.f32 %v1707_v15, %v173_v39  ;;  %v1855_v48 = vsel %vm441_vm4, 1.0, %v2560_v14  ;;  %v1872_v52 = vld [vmem:[%s2555_s4 + $0x30] sm:$0xff]  ;;  %vm446_vm5 = vcmp.eq.f32.partialorder %v1862_v50, 1.0 }
  0x21   :  { %193 = vadd.xlane.f32.xlu0 %v176_v53  ;;  %1344 = vmatpush.msra.mxu3 %v84_v55  ;;  %v1405_v49 = vpack.i.bf16 %v1852_v47, %v1855_v48  ;;  %vm447_vm6 = vcmp.eq.f32.partialorder %v1867_v51, 1.0  ;;  %v1879_v53 = vld [vmem:[%s2555_s4 + $0x38] sm:$0xff]  ;;  %vm438_vm7 = vcmp.eq.f32.partialorder %v1872_v52, 1.0  ;;  %v1883_v54 = vsel %vm446_vm5, 1.0, %v2560_v14 }
  0x22   :  { %1348 = vmatpush.msra.mxu1 %v82_v60  ;;  %1346 = vmatpush.msra.mxu2 %v83_v58  ;;  %v187_v43 = vmul.f32 %v1707_v15, %v171_v41  ;;  %v1886_v55 = vsel %vm447_vm6, 1.0, %v2560_v14  ;;  %vm439_vm8 = vcmp.eq.f32.partialorder %v1879_v53, 1.0  ;;  %v1890_v56 = vsel %vm438_vm7, 1.0, %v2560_v14 }
  0x23   :  { %1347 = vmatpush.msra.mxu3 %v83_v58  ;;  %v1895_v58 = vsel %vm439_vm8, 1.0, %v2560_v14  ;;  %vm444_vm9 = vcmp.eq.f32.partialorder %v1914_v2, 1.0  ;;  %vm445_vm10 = vcmp.eq.f32.partialorder %v1919_v4, 1.0  ;;  %vm434_vm11 = vcmp.eq.f32.partialorder %v108_v63, 1.0 }
  0x24   :  { %1351 = vmatpush.msra.mxu1 %v1722_v28  ;;  %1349 = vmatpush.msra.mxu2 %v82_v60  ;;  %v1410_v59 = vpack.i.bf16 %v1890_v56, %v1895_v58  ;;  %v1924_v5 = vsel %vm444_vm9, 1.0, %v2560_v14  ;;  %v1927_v7 = vsel %vm445_vm10, 1.0, %v2560_v14  ;;  %v1938_v19 = vsel %vm434_vm11, 1.0, %v2560_v14 }
  0x25   :  { %1350 = vmatpush.msra.mxu3 %v82_v60  ;;  %v1394_v10 = vpack.i.bf16 %v1924_v5, %v1927_v7  ;;  %2577 = vst [vmem:[#allocation17_spill] sm:$0xff] %v1938_v19  ;;  %vm482_vm13 = vcmp.eq.f32.partialorder %v108_v63, -1.0  ;;  %v530_v29 = vmul.f32 0.7, %v1938_v19  ;;  %vm484_vm5 = vcmp.eq.f32.partialorder %v110_v31, -1.0 }
  0x26   :  { %1354 = vmatpush.msra.mxu1 %v1727_v34  ;;  %1352 = vmatpush.msra.mxu2 %v1722_v28  ;;  %v1309_v36 = vsel %vm482_vm13, 1.0, %v2560_v14 }
  0x27   :  { %207 = vadd.xlane.f32.xlu2 %v183_v9  ;;  %1353 = vmatpush.msra.mxu3 %v1722_v28  ;;  %v140_v28 = vsub.f32 %v70_v38, %v1758_v57  ;;  %v1388_v57 = vpack.i.bf16 %v1883_v54, %v1886_v55  ;;  %v106_v9 = vld [vmem:[%s2555_s4] sm:$0xff] }
  0x28   :  { %205 = vadd.xlane.f32.xlu1 %v182_v11  ;;  %1357 = vmatpush.msra.mxu1 %v1733_v37  ;;  %vm432_vm12 = vcmp.eq.f32.partialorder %v106_v9, 1.0  ;;  %vm480_vm14 = vcmp.eq.f32.partialorder %v106_v9, -1.0 }
  0x29   :  { %203 = vadd.xlane.f32.xlu0 %v181_v13  ;;  %1355 = vmatpush.msra.mxu2 %v1727_v34  ;;  %v156_v44 = vadd.f32 1e-06, %v140_v28 }
  0x2a   :  { %1360 = vmatpush.msra.mxu1 %v1701_v12  ;;  %1356 = vmatpush.msra.mxu3 %v1727_v34  ;;  %v190_v34 = vmul.f32 %v1707_v15, %v174_v40  ;;  %v1307_v40 = vsel %vm480_vm14, 1.0, %v2560_v14 }
  0x2b   :  { %1358 = vmatpush.msra.mxu2 %v1733_v37 }
  0x2c   :  { %1363 = vmatpush.msra.mxu1 %v1682_v3  ;;  %1359 = vmatpush.msra.mxu3 %v1733_v37  ;;  %v172_v37 = vmul.f32 %v156_v44, %v156_v44 }
  0x2d   :  { %1361 = vmatpush.msra.mxu2 %v1701_v12 }
  0x2e   :  { %1366 = vmatpush.msra.mxu1 %v1710_v18  ;;  %1362 = vmatpush.msra.mxu3 %v1701_v12  ;;  %v188_v12 = vmul.f32 %v1707_v15, %v172_v37  ;;  %v546_v37 = vadd.f32 0.3, %v530_v29 }
  0x2f   :  { %213 = vadd.xlane.f32.xlu2 %v186_v30  ;;  %1364 = vmatpush.msra.mxu2 %v1682_v3  ;;  %v1951_v30 = vsel %vm432_vm12, 1.0, %v2560_v14 }
  0x30   :  { %211 = vadd.xlane.f32.xlu1 %v185_v32  ;;  %1369 = vmatpush.msra.mxu1 %v1689_v6  ;;  %2578 = vst [vmem:[#allocation18_spill] sm:$0xff] %v1951_v30 }
  0x31   :  { %209 = vadd.xlane.f32.xlu0 %v184_v33  ;;  %1365 = vmatpush.msra.mxu3 %v1682_v3  ;;  %v1822_v3 = vld [vmem:[%s2555_s4 + $0x50] sm:$0xff] }
  0x32   :  { %1372 = vmatpush.msra.mxu1 %v1715_v20  ;;  %1367 = vmatpush.msra.mxu2 %v1710_v18  ;;  %2575 = vst [vmem:[#allocation15_spill] sm:$0xff] %v1822_v3  ;;  %vm442_vm1 = vcmp.eq.f32.partialorder %v1822_v3, 1.0 }
  0x33   :  { %1368 = vmatpush.msra.mxu3 %v1710_v18  ;;  %v1832_v15 = vsel %vm442_vm1, 1.0, %v2560_v14  ;;  %vm436_vm1 = vcmp.eq.f32.partialorder %v110_v31, 1.0 }
  0x34   :  { %1375 = vmatpush.msra.mxu1 %v1694_v8  ;;  %1370 = vmatpush.msra.mxu2 %v1689_v6  ;;  %2576 = vst [vmem:[#allocation16_spill] sm:$0xff] %v1832_v15 }
  0x35   :  { %1371 = vmatpush.msra.mxu3 %v1689_v6  ;;  %v1827_v6 = vld [vmem:[%s2555_s4 + $0x58] sm:$0xff] }
  0x36   :  { %1373 = vmatpush.msra.mxu2 %v1715_v20  ;;  %vm443_vm2 = vcmp.eq.f32.partialorder %v1827_v6, 1.0 }
  0x37   :  { %219 = vadd.xlane.f32.xlu2 %v189_v42  ;;  %1374 = vmatpush.msra.mxu3 %v1715_v20  ;;  %v1626_v20 = vmov 0   ;;  %v528_v42 = vmul.f32 0.7, %v1951_v30 }
  0x38   :  { %221 = vadd.xlane.f32.xlu1 %v190_v34  ;;  %1376 = vmatpush.msra.mxu2 %v1694_v8 }
  0x39   :  { %215 = vadd.xlane.f32.xlu0 %v187_v43  ;;  %1377 = vmatpush.msra.mxu3 %v1694_v8  ;;  %v1835_v8 = vsel %vm443_vm2, 1.0, %v2560_v14  ;;  %v544_v29 = vadd.f32 0.3, %v528_v42 }
  0x3a   :  { %v1400_v18 = vpack.i.bf16 %v1832_v15, %v1835_v8  ;;  %1399 = vset.pattern.permute.xlu0 %v1626_v20  ;;  %1387 = vset.pattern.permute.xlu1 %v1626_v20 }
  0x3b   :  { %1393 = vset.pattern.permute.xlu2 %v1626_v20 }
  0x41   :  { %217 = vadd.xlane.f32.xlu0 %v188_v12 }
  0x4f   :  { %1395 = vperm.xlu2 %1393, %v1394_v10  }
  0x51   :  { %1389 = vperm.xlu1 %1387, %v1388_v57   ;;  %v562_v57 = vmul.f32 1.2, %v1309_v36 }
  0x55   :  { %1401 = vperm.xlu0 %1399, %v1400_v18  }
  0x5d   :  { %1406 = vperm.xlu0 %1399, %v1405_v49  }
  0x65   :  { %1411 = vperm.xlu0 %1399, %v1410_v59   ;;  %v560_v59 = vmul.f32 1.2, %v1307_v40 }
  0x8a   :  { %v1899_v60 = vpop.xlane.xlu2 %199 }
  0x8b   :  { %1431 = vrsqrt.f32 %v1899_v60  ;;  %v1902_v61 = vpop.xlane.xlu1 %195  ;;  %vm278_vm3 = vcmp.eq.f32.partialorder %v1899_v60, inf  ;;  %vm280_vm7 = vcmp.eq.f32.partialorder %v1899_v60, 0.0 }
  0x8c   :  { %v1904_v62 = vpop.xlane.xlu0 %191  ;;  %1433 = vrsqrt.f32 %v1902_v61  ;;  %vm254_vm15 = vcmp.eq.f32.partialorder %v1902_v61, inf  ;;  %v257_v39 = vand.u32 2147483648, %v1902_v61  ;;  %vm256_vm2 = vcmp.eq.f32.partialorder %v1902_v61, 0.0 }
  0x8d   :  { %1435 = vrsqrt.f32 %v1904_v62  ;;  %vm230_vm4 = vcmp.eq.f32.partialorder %v1904_v62, inf  ;;  %vm232_vm6 = vcmp.eq.f32.partialorder %v1904_v62, 0.0 }
  0x91   :  { %v1432_v11 = vpop.eup %1431 }
  0x92   :  { %v1434_v13 = vpop.eup %1433  ;;  %v272_v16 = vmul.f32 %v1432_v11, %v1899_v60  ;;  %v1935_v17 = vpop.xlane.xlu2 %201 }
  0x93   :  { %v1436_v21 = vpop.eup %1435  ;;  %v248_v22 = vmul.f32 %v1434_v13, %v1902_v61  ;;  %1437 = vrsqrt.f32 %v1935_v17  ;;  %v1942_v23 = vpop.xlane.xlu1 %197 }
  0x94   :  { %v1944_v24 = vpop.xlane.xlu0 %193  ;;  %v273_v25 = vmul.f32 %v1432_v11, %v272_v16  ;;  %v224_v26 = vmul.f32 %v1436_v21, %v1904_v62  ;;  %1439 = vrsqrt.f32 %v1942_v23  ;;  %vm266_vm10 = vcmp.eq.f32.partialorder %v1942_v23, inf }
  0x95   :  { %v249_v27 = vmul.f32 %v1434_v13, %v248_v22  ;;  %1441 = vrsqrt.f32 %v1944_v24  ;;  %vm242_vm8 = vcmp.eq.f32.partialorder %v1944_v24, inf  ;;  %vm244_vm9 = vcmp.eq.f32.partialorder %v1944_v24, 0.0 }
  0x96   :  { %v274_v32 = vmul.f32 0.5, %v273_v25  ;;  %v225_v35 = vmul.f32 %v1436_v21, %v224_v26  ;;  %v1983_v25 = vsel %vm436_vm1, 1.0, %v2560_v14  ;;  %vm268_vm11 = vcmp.eq.f32.partialorder %v1942_v23, 0.0 }
  0x97   :  { %v250_v38 = vmul.f32 0.5, %v249_v27  ;;  %2579 = vst [vmem:[#allocation19_spill] sm:$0xff] %v1983_v25  ;;  %v532_v40 = vmul.f32 0.7, %v1983_v25 }
  0x98   :  { %v275_v41 = vsub.f32 1.5, %v274_v32  ;;  %v226_v28 = vmul.f32 0.5, %v225_v35 }
  0x99   :  { %v1962_v34 = vpop.eup %1437  ;;  %v251_v43 = vsub.f32 1.5, %v250_v38 }
  0x9a   :  { %v1966_v12 = vpop.eup %1439  ;;  %v227_v18 = vsub.f32 1.5, %v226_v28  ;;  %v284_v20 = vmul.f32 %v1962_v34, %v1935_v17  ;;  %v1970_v49 = vpop.xlane.xlu2 %207  ;;  %v276_v26 = vmul.f32 %v1432_v11, %v275_v41 }
  0x9b   :  { %v1972_v63 = vpop.eup %1441  ;;  %v252_v9 = vmul.f32 %v1434_v13, %v251_v43  ;;  %v260_v10 = vmul.f32 %v1966_v12, %v1942_v23  ;;  %1443 = vrsqrt.f32 %v1970_v49  ;;  %v1977_v16 = vpop.xlane.xlu1 %205  ;;  %v1997_v43 = vadd.f32 %v562_v57, %v546_v37 }
  0x9c   :  { %v1979_v22 = vpop.xlane.xlu0 %203  ;;  %v285_v13 = vmul.f32 %v1962_v34, %v284_v20  ;;  %v236_v27 = vmul.f32 %v1972_v63, %v1944_v24  ;;  %v228_v35 = vmul.f32 %v1436_v21, %v227_v18  ;;  %1445 = vrsqrt.f32 %v1977_v16 }
  0x9d   :  { %v253_v32 = vmul.f32 %v252_v9, %v1902_v61  ;;  %v261_v36 = vmul.f32 %v1966_v12, %v260_v10  ;;  %1447 = vrsqrt.f32 %v1979_v22  ;;  %v277_v10 = vmul.f32 %v276_v26, %v1899_v60 }
  0x9e   :  { %v286_v38 = vmul.f32 0.5, %v285_v13  ;;  %v237_v11 = vmul.f32 %v1972_v63, %v236_v27  ;;  %v229_v13 = vmul.f32 %v228_v35, %v1904_v62  ;;  %v1311_v57 = vsel %vm484_vm5, 1.0, %v2560_v14 }
  0x9f   :  { %v262_v28 = vmul.f32 0.5, %v261_v36  ;;  %v255_v20 = vsel %vm254_vm15, %v1902_v61, %v253_v32  ;;  %v2019_v32 = vadd.f32 %v560_v59, %v544_v29  ;;  %v548_v26 = vadd.f32 0.3, %v532_v40 }
  0xa0   :  { %v238_v42 = vmul.f32 0.5, %v237_v11  ;;  %v258_v37 = vsel %vm256_vm2, %v257_v39, %v255_v20  ;;  %v287_v27 = vsub.f32 1.5, %v286_v38  ;;  %v564_v59 = vmul.f32 1.2, %v1311_v57 }
  0xa1   :  { %v1444_v9 = vpop.eup %1443  ;;  %418 = vst.msk [vmem:[%s2556_s5 + $0x10] sm:$0xff] %vm415_vm0, %v258_v37  ;;  %v263_v61 = vsub.f32 1.5, %v262_v28  ;;  %v594_v20 = vmul.f32 -3.3333333, %v258_v37  ;;  %v231_v28 = vsel %vm230_vm4, %v1904_v62, %v229_v13  ;;  %vm302_vm14 = vcmp.eq.f32.partialorder %v1979_v22, inf }
  0xa2   :  { %v320_v36 = vmul.f32 %v1444_v9, %v1970_v49  ;;  %v2013_v11 = vpop.xlane.xlu2 %213  ;;  %v2021_v35 = vpop.eup %1445  ;;  %v239_v39 = vsub.f32 1.5, %v238_v42  ;;  %v279_v42 = vsel %vm278_vm3, %v1899_v60, %v277_v10  ;;  %v288_v37 = vmul.f32 %v1962_v34, %v287_v27 }
  0xa3   :  { %1449 = vrsqrt.f32 %v2013_v11  ;;  %v2024_v31 = vpop.xlane.xlu1 %211  ;;  %v308_v21 = vmul.f32 %v2021_v35, %v1977_v16  ;;  %v1448_v29 = vpop.eup %1447  ;;  %v264_v14 = vmul.f32 %v1966_v12, %v263_v61  ;;  %v612_v18 = vmul.f32 1.442695, %v594_v20 }
  0xa4   :  { %v2026_v38 = vpop.xlane.xlu0 %209  ;;  %v321_v0 = vmul.f32 %v1444_v9, %v320_v36  ;;  %1451 = vrsqrt.f32 %v2024_v31  ;;  %v296_v57 = vmul.f32 %v1448_v29, %v1979_v22  ;;  %v240_v40 = vmul.f32 %v1972_v63, %v239_v39 }
  0xa5   :  { %v309_v41 = vmul.f32 %v2021_v35, %v308_v21  ;;  %1453 = vrsqrt.f32 %v2026_v38  ;;  %v2580_v10 = vand.u32 2147483648, %v1904_v62  ;;  %v2581_v63 = vand.u32 2147483648, %v1899_v60 }
  0xa6   :  { %v322_v36 = vmul.f32 0.5, %v321_v0  ;;  %v297_v44 = vmul.f32 %v1448_v29, %v296_v57  ;;  %1455 = vpow2.f32 %v612_v18  ;;  %v2061_v62 = vmul.f32 %v288_v37, %v1935_v17 }
  0xa7   :  { %v310_v33 = vmul.f32 0.5, %v309_v41  ;;  %v234_v0 = vsel %vm232_vm6, %v2580_v10, %v231_v28  ;;  %v282_v41 = vsel %vm280_vm7, %v2581_v63, %v279_v42  ;;  %v2074_v60 = vmul.f32 %v264_v14, %v1942_v23 }
  0xa8   :  { %v323_v13 = vsub.f32 1.5, %v322_v36  ;;  %v592_v12 = vmul.f32 -3.3333333, %v234_v0  ;;  %416 = vst.msk [vmem:[%s2556_s5] sm:$0xff] %vm415_vm0, %v234_v0  ;;  %v298_v27 = vmul.f32 0.5, %v297_v44  ;;  %v241_v36 = vmul.f32 %v240_v40, %v1944_v24 }
  0xa9   :  { %v1450_v34 = vpop.eup %1449  ;;  %420 = vst.msk [vmem:[%s2556_s5 + $0x20] sm:$0xff] %vm415_vm0, %v282_v41  ;;  %v311_v42 = vsub.f32 1.5, %v310_v33  ;;  %v2089_v1 = vadd.f32 %v564_v59, %v548_v26  ;;  %v107_v26 = vld [vmem:[%s2555_s4 + $0x8] sm:$0xff]  ;;  %vm290_vm15 = vcmp.eq.f32.partialorder %v1935_v17, inf  ;;  %vm326_vm2 = vcmp.eq.f32.partialorder %v1970_v49, inf }
  0xaa   :  { %v356_v61 = vmul.f32 %v1450_v34, %v2013_v11  ;;  %v2065_v39 = vpop.xlane.xlu2 %219  ;;  %v2071_v20 = vpop.eup %1451  ;;  %v324_v28 = vmul.f32 %v1444_v9, %v323_v13  ;;  %v299_v57 = vsub.f32 1.5, %v298_v27  ;;  %v608_v33 = vmul.f32 1.442695, %v592_v12 }
  0xab   :  { %1457 = vrsqrt.f32 %v2065_v39  ;;  %v2077_v44 = vpop.xlane.xlu1 %221  ;;  %v1454_v63 = vpop.eup %1453  ;;  %v344_v18 = vmul.f32 %v2071_v20, %v2024_v31  ;;  %vm433_vm12 = vcmp.eq.f32.partialorder %v107_v26, 1.0  ;;  %vm481_vm13 = vcmp.eq.f32.partialorder %v107_v26, -1.0 }
  0xac   :  { %v2079_v37 = vpop.xlane.xlu0 %215  ;;  %v357_v10 = vmul.f32 %v1450_v34, %v356_v61  ;;  %1459 = vrsqrt.f32 %v2077_v44  ;;  %v332_v13 = vmul.f32 %v1454_v63, %v2026_v38  ;;  %v1456_v40 = vpop.eup %1455  ;;  %v2092_v27 = vmul.f32 %v324_v28, %v1970_v49 }
  0xad   :  { %v312_v61 = vmul.f32 %v2021_v35, %v311_v42  ;;  %v345_v0 = vmul.f32 %v2071_v20, %v344_v18  ;;  %1461 = vrsqrt.f32 %v2079_v37  ;;  %v300_v14 = vmul.f32 %v1448_v29, %v299_v57 }
  0xae   :  { %v358_v9 = vmul.f32 0.5, %v357_v10  ;;  %v333_v12 = vmul.f32 %v1454_v63, %v332_v13  ;;  %v2098_v10 = vmul.f32 %v1456_v40, %v1997_v43  ;;  %1463 = vpow2.f32 %v608_v33 }
  0xaf   :  { %v346_v28 = vmul.f32 0.5, %v345_v0  ;;  %v596_v35 = vmul.f32 -3.3333333, %v282_v41  ;;  %v243_v18 = vsel %vm242_vm8, %v1944_v24, %v241_v36  ;;  %v2583_v43 = vand.u32 2147483648, %v1944_v24 }
  0xb0   :  { %v359_v30 = vsub.f32 1.5, %v358_v9  ;;  %2582 = vst [vmem:[#allocation20_spill] sm:$0xff] %v2098_v10  ;;  %v334_v42 = vmul.f32 0.5, %v333_v12  ;;  %687 = vperm.xlu0 %1399, %v2098_v10   ;;  %v2123_v12 = vmul.f32 %v312_v61, %v1977_v16  ;;  %v2584_v61 = vmov 0.0  }
  0xb1   :  { %v1458_v59 = vpop.eup %1457  ;;  %v246_v9 = vsel %vm244_vm9, %v2583_v43, %v243_v18  ;;  %v347_v33 = vsub.f32 1.5, %v346_v28  ;;  %v616_v36 = vmul.f32 1.442695, %v596_v35  ;;  %v301_v28 = vmul.f32 %v300_v14, %v1979_v22 }
  0xb2   :  { %v360_v29 = vmul.f32 %v1450_v34, %v359_v30  ;;  %v392_v57 = vmul.f32 %v1458_v59, %v2065_v39  ;;  %v1460_v0 = vpop.eup %1459  ;;  %417 = vst.msk [vmem:[%s2556_s5 + $0x8] sm:$0xff] %vm415_vm0, %v246_v9  ;;  %v335_v30 = vsub.f32 1.5, %v334_v42  ;;  %v2138_v14 = vsel %vm433_vm12, 1.0, %v2584_v61 }
  0xb3   :  { %v404_v24 = vmul.f32 %v1460_v0, %v2077_v44  ;;  %v1462_v40 = vpop.eup %1461  ;;  %v2134_v21 = vmul.f32 %v2071_v20, %v347_v33  ;;  %v1308_v18 = vsel %vm481_vm13, 1.0, %v2584_v61  ;;  %v529_v20 = vmul.f32 0.7, %v2138_v14 }
  0xb4   :  { %v2115_v13 = vpop.xlane.xlu0 %217  ;;  %v393_v34 = vmul.f32 %v1458_v59, %v392_v57  ;;  %v2130_v35 = vmul.f32 %v360_v29, %v2013_v11  ;;  %v368_v43 = vmul.f32 %v1462_v40, %v2079_v37  ;;  %v1464_v41 = vpop.eup %1463  ;;  %v336_v10 = vmul.f32 %v1454_v63, %v335_v30 }
  0xb5   :  { %1465 = vrsqrt.f32 %v2115_v13  ;;  %v405_v57 = vmul.f32 %v1460_v0, %v404_v24  ;;  %v2145_v24 = vmul.f32 %v1464_v41, %v2019_v32  ;;  %v561_v33 = vmul.f32 1.2, %v1308_v18 }
  0xb6   :  { %v394_v42 = vmul.f32 0.5, %v393_v34  ;;  %1467 = vpow2.f32 %v616_v36  ;;  %v369_v29 = vmul.f32 %v1462_v40, %v368_v43  ;;  %v109_v34 = vld [vmem:[%s2555_s4 + $0x18] sm:$0xff]  ;;  %v593_v36 = vmul.f32 -3.3333333, %v246_v9 }
  0xb7   :  { %v406_v25 = vmul.f32 0.5, %v405_v57  ;;  %v267_v63 = vsel %vm266_vm10, %v1942_v23, %v2074_v60  ;;  %677 = vperm.xlu1 %1387, %v2145_v24   ;;  %v2585_v41 = vand.u32 2147483648, %v1942_v23  ;;  %vm435_vm1 = vcmp.eq.f32.partialorder %v109_v34, 1.0 }
  0xb8   :  { %v395_v19 = vsub.f32 1.5, %v394_v42  ;;  %v370_v3 = vmul.f32 0.5, %v369_v29  ;;  %v545_v42 = vadd.f32 0.3, %v529_v20  ;;  %v610_v32 = vmul.f32 1.442695, %v593_v36 }
  0xb9   :  { %v407_v15 = vsub.f32 1.5, %v406_v25  ;;  %v270_v9 = vsel %vm268_vm11, %v2585_v41, %v267_v63  ;;  %v2171_v23 = vsel %vm435_vm1, 1.0, %v2584_v61  ;;  %vm483_vm3 = vcmp.eq.f32.partialorder %v109_v34, -1.0 }
  0xba   :  { %v396_v26 = vmul.f32 %v1458_v59, %v395_v19  ;;  %v2160_v19 = vmul.f32 %v336_v10, %v2026_v38  ;;  %v371_v59 = vsub.f32 1.5, %v370_v3  ;;  %419 = vst.msk [vmem:[%s2556_s5 + $0x18] sm:$0xff] %vm415_vm0, %v270_v9  ;;  %1469 = vpow2.f32 %v610_v32 }
  0xbb   :  { %v1466_v30 = vpop.eup %1465  ;;  %v408_v25 = vmul.f32 %v1460_v0, %v407_v15  ;;  %v577_v0 = vadd.f32 %v561_v33, %v545_v42  ;;  %v1310_v43 = vsel %vm483_vm3, 1.0, %v2584_v61  ;;  %v531_v29 = vmul.f32 0.7, %v2171_v23 }
  0xbc   :  { %v380_v60 = vmul.f32 %v1466_v30, %v2115_v13  ;;  %v1468_v18 = vpop.eup %1467  ;;  %v2168_v57 = vmul.f32 %v396_v26, %v2065_v39  ;;  %v372_v3 = vmul.f32 %v1462_v40, %v371_v59  ;;  %v595_v20 = vmul.f32 -3.3333333, %v270_v9 }
  0xbd   :  { %v2174_v10 = vmul.f32 %v408_v25, %v2077_v44  ;;  %v303_v36 = vsel %vm302_vm14, %v1979_v22, %v301_v28  ;;  %vm338_vm4 = vcmp.eq.f32.partialorder %v2026_v38, inf  ;;  %v2183_v34 = vmul.f32 %v1468_v18, %v2089_v1  ;;  %v111_v28 = vld [vmem:[%s2555_s4 + $0x28] sm:$0xff] }
  0xbe   :  { %v381_v15 = vmul.f32 %v1466_v30, %v380_v60  ;;  %v563_v63 = vmul.f32 1.2, %v1310_v43  ;;  %vm304_vm5 = vcmp.eq.f32.partialorder %v1979_v22, 0.0  ;;  %v547_v40 = vadd.f32 0.3, %v531_v29 }
  0xbf   :  { %v614_v33 = vmul.f32 1.442695, %v595_v20  ;;  %v2586_v42 = vand.u32 2147483648, %v1979_v22  ;;  %vm486_vm6 = vcmp.eq.f32.partialorder %v1872_v52, -1.0  ;;  %v534_v1 = vmul.f32 0.7, %v1890_v56  ;;  %697 = vperm.xlu1 %1387, %v2183_v34  }
  0xc0   :  { %v382_v26 = vmul.f32 0.5, %v381_v15  ;;  %v1313_v9 = vsel %vm486_vm6, 1.0, %v2584_v61  ;;  %v1470_v59 = vpop.eup %1469  ;;  %v2195_v60 = vmul.f32 %v372_v3, %v2079_v37  ;;  %v291_v52 = vsel %vm290_vm15, %v1935_v17, %v2061_v62 }
  0xc1   :  { %v306_v32 = vsel %vm304_vm5, %v2586_v42, %v303_v36  ;;  %1471 = vpow2.f32 %v614_v33  ;;  %v566_v22 = vmul.f32 1.2, %v1313_v9  ;;  %v2206_v18 = vmul.f32 %v1470_v59, %v577_v0 }
  0xc2   :  { %v383_v41 = vsub.f32 1.5, %v382_v26  ;;  %v598_v25 = vmul.f32 -3.3333333, %v306_v32  ;;  %422 = vst.msk [vmem:[%s2556_s5 + $0x30] sm:$0xff] %vm415_vm0, %v306_v32  ;;  %v579_v15 = vadd.f32 %v563_v63, %v547_v40  ;;  %v550_v43 = vadd.f32 0.3, %v534_v1 }
  0xc3   :  { %vm314_vm7 = vcmp.eq.f32.partialorder %v1977_v16, inf  ;;  %vm292_vm8 = vcmp.eq.f32.partialorder %v1935_v17, 0.0  ;;  %vm437_vm9 = vcmp.eq.f32.partialorder %v111_v28, 1.0  ;;  %vm485_vm10 = vcmp.eq.f32.partialorder %v111_v28, -1.0  ;;  %682 = vperm.xlu2 %1393, %v2206_v18  }
  0xc4   :  { %v620_v3 = vmul.f32 1.442695, %v598_v25  ;;  %v327_v29 = vsel %vm326_vm2, %v1970_v49, %v2092_v27  ;;  %v384_v20 = vmul.f32 %v1466_v30, %v383_v41  ;;  %v582_v62 = vadd.f32 %v566_v22, %v550_v43 }
  0xc5   :  { %v2587_v0 = vand.u32 2147483648, %v1935_v17  ;;  %vm398_vm11 = vcmp.eq.f32.partialorder %v2065_v39, inf  ;;  %v2223_v26 = vsel %vm437_vm9, 1.0, %v2584_v61  ;;  %v1312_v27 = vsel %vm485_vm10, 1.0, %v2584_v61 }
  0xc6   :  { %1473 = vpow2.f32 %v620_v3  ;;  %vm328_vm12 = vcmp.eq.f32.partialorder %v1970_v49, 0.0  ;;  %v533_v63 = vmul.f32 0.7, %v2223_v26  ;;  %v565_v40 = vmul.f32 1.2, %v1312_v27 }
  0xc7   :  { %v294_v36 = vsel %vm292_vm8, %v2587_v0, %v291_v52  ;;  %v2588_v17 = vand.u32 2147483648, %v1970_v49  ;;  %vm488_vm13 = vcmp.eq.f32.partialorder %v1842_v45, -1.0  ;;  %v1472_v42 = vpop.eup %1471  ;;  %v536_v41 = vmul.f32 0.7, %v1852_v47 }
  0xc8   :  { %421 = vst.msk [vmem:[%s2556_s5 + $0x28] sm:$0xff] %vm415_vm0, %v294_v36  ;;  %v597_v30 = vmul.f32 -3.3333333, %v294_v36  ;;  %v1315_v28 = vsel %vm488_vm13, 1.0, %v2584_v61  ;;  %v339_v9 = vsel %vm338_vm4, %v2026_v38, %v2160_v19  ;;  %v2242_v49 = vmul.f32 %v384_v20, %v2115_v13 }
  0xc9   :  { %v330_v33 = vsel %vm328_vm12, %v2588_v17, %v327_v29  ;;  %v2244_v45 = vmul.f32 %v1472_v42, %v579_v15  ;;  %v549_v1 = vadd.f32 0.3, %v533_v63  ;;  %vm374_vm14 = vcmp.eq.f32.partialorder %v2079_v37, inf }
  0xca   :  { %v618_v32 = vmul.f32 1.442695, %v597_v30  ;;  %424 = vst.msk [vmem:[%s2556_s5 + $0x40] sm:$0xff] %vm415_vm0, %v330_v33  ;;  %v600_v25 = vmul.f32 -3.3333333, %v330_v33  ;;  %vm340_vm15 = vcmp.eq.f32.partialorder %v2026_v38, 0.0  ;;  %v399_v33 = vsel %vm398_vm11, %v2065_v39, %v2168_v57 }
  0xcb   :  { %v568_v59 = vmul.f32 1.2, %v1315_v28  ;;  %vm489_vm1 = vcmp.eq.f32.partialorder %v1847_v46, -1.0  ;;  %v552_v52 = vadd.f32 0.3, %v536_v41  ;;  %v2589_v19 = vand.u32 2147483648, %v2026_v38  ;;  %692 = vperm.xlu2 %1393, %v2244_v45  }
  0xcc   :  { %1475 = vpow2.f32 %v618_v32  ;;  %v1474_v22 = vpop.eup %1473  ;;  %v624_v43 = vmul.f32 1.442695, %v600_v25  ;;  %v1316_v29 = vsel %vm489_vm1, 1.0, %v2584_v61  ;;  %vm410_vm2 = vcmp.eq.f32.partialorder %v2077_v44, inf }
  0xcd   :  { %v342_v3 = vsel %vm340_vm15, %v2589_v19, %v339_v9  ;;  %v2253_v15 = vmul.f32 %v1474_v22, %v582_v62  ;;  %v581_v20 = vadd.f32 %v565_v40, %v549_v1  ;;  %v537_v0 = vmul.f32 0.7, %v1855_v48 }
  0xce   :  { %v569_v36 = vmul.f32 1.2, %v1316_v29  ;;  %425 = vst.msk [vmem:[%s2556_s5 + $0x48] sm:$0xff] %vm415_vm0, %v342_v3  ;;  %1477 = vpow2.f32 %v624_v43  ;;  %v601_v46 = vmul.f32 -3.3333333, %v342_v3  ;;  %v315_v38 = vsel %vm314_vm7, %v1977_v16, %v2123_v12 }
  0xcf   :  { %vm316_vm3 = vcmp.eq.f32.partialorder %v1977_v16, 0.0  ;;  %707 = vperm.xlu1 %1387, %v2253_v15   ;;  %v553_v62 = vadd.f32 0.3, %v537_v0  ;;  %v2590_v27 = vand.u32 2147483648, %v1977_v16  ;;  %vm487_vm4 = vcmp.eq.f32.partialorder %v1879_v53, -1.0 }
  0xd0   :  { %v535_v63 = vmul.f32 0.7, %v1895_v58  ;;  %v626_v40 = vmul.f32 1.442695, %v601_v46  ;;  %v1314_v12 = vsel %vm487_vm4, 1.0, %v2584_v61  ;;  %vm362_vm5 = vcmp.eq.f32.partialorder %v2013_v11, inf }
  0xd1   :  { %v318_v30 = vsel %vm316_vm3, %v2590_v27, %v315_v38  ;;  %v584_v53 = vadd.f32 %v568_v59, %v552_v52  ;;  %v585_v42 = vadd.f32 %v569_v36, %v553_v62  ;;  %vm400_vm6 = vcmp.eq.f32.partialorder %v2065_v39, 0.0 }
  0xd2   :  { %423 = vst.msk [vmem:[%s2556_s5 + $0x38] sm:$0xff] %vm415_vm0, %v318_v30  ;;  %v599_v17 = vmul.f32 -3.3333333, %v318_v30  ;;  %v1476_v16 = vpop.eup %1475  ;;  %v551_v32 = vadd.f32 0.3, %v535_v63  ;;  %1479 = vpow2.f32 %v626_v40  ;;  %v2591_v9 = vand.u32 2147483648, %v2065_v39 }
  0xd3   :  { %v567_v28 = vmul.f32 1.2, %v1314_v12  ;;  %v2284_v25 = vmul.f32 %v1476_v16, %v581_v20  ;;  %vm494_vm7 = vcmp.eq.f32.partialorder %v1862_v50, -1.0  ;;  %v542_v57 = vmul.f32 0.7, %v1883_v54 }
  0xd4   :  { %v622_v41 = vmul.f32 1.442695, %v599_v17  ;;  %v402_v1 = vsel %vm400_vm6, %v2591_v9, %v399_v33  ;;  %v1478_v22 = vpop.eup %1477  ;;  %vm386_vm8 = vcmp.eq.f32.partialorder %v2115_v13, inf  ;;  %v1321_v52 = vsel %vm494_vm7, 1.0, %v2584_v61 }
  0xd5   :  { %430 = vst.msk [vmem:[%s2556_s5 + $0x70] sm:$0xff] %vm415_vm0, %v402_v1  ;;  %v606_v59 = vmul.f32 -3.3333333, %v402_v1  ;;  %v375_v39 = vsel %vm374_vm14, %v2079_v37, %v2195_v60  ;;  %vm376_vm9 = vcmp.eq.f32.partialorder %v2079_v37, 0.0  ;;  %v2299_v43 = vmul.f32 %v1478_v22, %v584_v53  ;;  %702 = vperm.xlu2 %1393, %v2284_v25  }
  0xd6   :  { %1481 = vpow2.f32 %v622_v41  ;;  %v558_v19 = vadd.f32 0.3, %v542_v57  ;;  %v574_v50 = vmul.f32 1.2, %v1321_v52  ;;  %v2592_v29 = vand.u32 2147483648, %v2079_v37 }
  0xd7   :  { %v636_v3 = vmul.f32 1.442695, %v606_v59  ;;  %vm492_vm10 = vcmp.eq.f32.partialorder %v1914_v2, -1.0  ;;  %v540_v0 = vmul.f32 0.7, %v1924_v5  ;;  %v411_v60 = vsel %vm410_vm2, %v2077_v44, %v2174_v10  ;;  %717 = vperm.xlu1 %1387, %v2299_v43  }
  0xd8   :  { %v378_v20 = vsel %vm376_vm9, %v2592_v29, %v375_v39  ;;  %v583_v36 = vadd.f32 %v567_v28, %v551_v32  ;;  %v1319_v46 = vsel %vm492_vm10, 1.0, %v2584_v61  ;;  %v1480_v2 = vpop.eup %1479  ;;  %vm350_vm11 = vcmp.eq.f32.partialorder %v2024_v31, inf }
  0xd9   :  { %1483 = vpow2.f32 %v636_v3  ;;  %v604_v38 = vmul.f32 -3.3333333, %v378_v20  ;;  %428 = vst.msk [vmem:[%s2556_s5 + $0x60] sm:$0xff] %vm415_vm0, %v378_v20  ;;  %v556_v37 = vadd.f32 0.3, %v540_v0  ;;  %vm412_vm12 = vcmp.eq.f32.partialorder %v2077_v44, 0.0 }
  0xda   :  { %v572_v62 = vmul.f32 1.2, %v1319_v46  ;;  %vm495_vm13 = vcmp.eq.f32.partialorder %v1867_v51, -1.0  ;;  %v2319_v10 = vmul.f32 %v1480_v2, %v585_v42  ;;  %v2593_v30 = vand.u32 2147483648, %v2077_v44 }
  0xdb   :  { %v632_v27 = vmul.f32 1.442695, %v604_v38  ;;  %v1322_v40 = vsel %vm495_vm13, 1.0, %v2584_v61  ;;  %v590_v17 = vadd.f32 %v574_v50, %v558_v19  ;;  %v543_v33 = vmul.f32 0.7, %v1886_v55 }
  0xdc   :  { %v414_v63 = vsel %vm412_vm12, %v2593_v30, %v411_v60  ;;  %v1482_v12 = vpop.eup %1481  ;;  %v575_v16 = vmul.f32 1.2, %v1322_v40  ;;  %v363_v51 = vsel %vm362_vm5, %v2013_v11, %v2130_v35  ;;  %722 = vperm.xlu0 %1399, %v2319_v10   ;;  %vm364_vm14 = vcmp.eq.f32.partialorder %v2013_v11, 0.0  ;;  %v2595_v60 = vld [vmem:[#allocation15_spill] sm:$0xff] }
  0xdd   :  { %431 = vst.msk [vmem:[%s2556_s5 + $0x78] sm:$0xff] %vm415_vm0, %v414_v63  ;;  %v2334_v44 = vmul.f32 %v1482_v12, %v583_v36  ;;  %1485 = vpow2.f32 %v632_v27  ;;  %v607_v53 = vmul.f32 -3.3333333, %v414_v63  ;;  %v559_v42 = vadd.f32 0.3, %v543_v33 }
  0xde   :  { %v2594_v32 = vand.u32 2147483648, %v2013_v11  ;;  %vm491_vm15 = vcmp.eq.f32.partialorder %v1827_v6, -1.0  ;;  %v539_v41 = vmul.f32 0.7, %v1835_v8  ;;  %v349_v35 = vmul.f32 %v2134_v21, %v2024_v31 }
  0xdf   :  { %v1484_v9 = vpop.eup %1483  ;;  %v638_v1 = vmul.f32 1.442695, %v607_v53  ;;  %v387_v11 = vsel %vm386_vm8, %v2115_v13, %v2242_v49  ;;  %v389_v6 = vand.u32 2147483648, %v2115_v13  ;;  %712 = vperm.xlu2 %1393, %v2334_v44   ;;  %v588_v22 = vadd.f32 %v572_v62, %v556_v37  ;;  %v2597_v37 = vld [vmem:[#allocation16_spill] sm:$0xff] }
  0xe0   :  { %v366_v28 = vsel %vm364_vm14, %v2594_v32, %v363_v51  ;;  %v654_v59 = vmul.f32 %v1484_v9, %v590_v17  ;;  %v1318_v21 = vsel %vm491_vm15, 1.0, %v2584_v61  ;;  %vm388_vm1 = vcmp.eq.f32.partialorder %v2115_v13, 0.0 }
  0xe1   :  { %427 = vst.msk [vmem:[%s2556_s5 + $0x58] sm:$0xff] %vm415_vm0, %v366_v28  ;;  %v603_v57 = vmul.f32 -3.3333333, %v366_v28  ;;  %1487 = vpow2.f32 %v638_v1  ;;  %vm493_vm2 = vcmp.eq.f32.partialorder %v1919_v4, -1.0  ;;  %v591_v39 = vadd.f32 %v575_v16, %v559_v42 }
  0xe2   :  { %v390_v19 = vsel %vm388_vm1, %v389_v6, %v387_v11  ;;  %v1320_v50 = vsel %vm493_vm2, 1.0, %v2584_v61  ;;  %v541_v49 = vmul.f32 0.7, %v1927_v7  ;;  %v555_v29 = vadd.f32 0.3, %v539_v41 }
  0xe3   :  { %v630_v52 = vmul.f32 1.442695, %v603_v57  ;;  %v1486_v3 = vpop.eup %1485  ;;  %v605_v20 = vmul.f32 -3.3333333, %v390_v19  ;;  %429 = vst.msk [vmem:[%s2556_s5 + $0x68] sm:$0xff] %vm415_vm0, %v390_v19  ;;  %v351_v13 = vsel %vm350_vm11, %v2024_v31, %v349_v35  ;;  %vm352_vm3 = vcmp.eq.f32.partialorder %v2024_v31, 0.0 }
  0xe4   :  { %v652_v4 = vmul.f32 %v1486_v3, %v588_v22  ;;  %v571_v0 = vmul.f32 1.2, %v1318_v21  ;;  %vm490_vm4 = vcmp.eq.f32.partialorder %v2595_v60, -1.0  ;;  %747 = vperm.xlu0 %1399, %v654_v59   ;;  %v573_v36 = vmul.f32 1.2, %v1320_v50 }
  0xe5   :  { %1489 = vpow2.f32 %v630_v52  ;;  %v634_v46 = vmul.f32 1.442695, %v605_v20  ;;  %v2596_v38 = vand.u32 2147483648, %v2024_v31  ;;  %v538_v62 = vmul.f32 0.7, %v2597_v37 }
  0xe6   :  { %737 = vperm.xlu1 %1387, %v652_v4   ;;  %v557_v27 = vadd.f32 0.3, %v541_v49  ;;  %v1317_v30 = vsel %vm490_vm4, 1.0, %v2584_v61  ;;  %v587_v17 = vadd.f32 %v571_v0, %v555_v29  ;;  %v661_v42 = vmul.f32 %v2223_v26, %v2284_v25 }
  0xe7   :  { %v354_v2 = vsel %vm352_vm3, %v2596_v38, %v351_v13  ;;  %v1488_v40 = vpop.eup %1487  ;;  %1491 = vpow2.f32 %v634_v46  ;;  %v554_v31 = vadd.f32 0.3, %v538_v62  ;;  %v570_v51 = vmul.f32 1.2, %v1317_v30 }
  0xe8   :  { %426 = vst.msk [vmem:[%s2556_s5 + $0x50] sm:$0xff] %vm415_vm0, %v354_v2  ;;  %v602_v63 = vmul.f32 -3.3333333, %v354_v2  ;;  %v655_v12 = vmul.f32 %v1488_v40, %v591_v39  ;;  %v589_v53 = vadd.f32 %v573_v36, %v557_v27  ;;  %v659_v32 = vmul.f32 %v2171_v23, %v2244_v45 }
  0xe9   :  { %v657_v28 = vmul.f32 %v2138_v14, %v2206_v18  ;;  %v586_v35 = vadd.f32 %v570_v51, %v554_v31  ;;  %v668_v25 = vmul.f32 %v1924_v5, %v652_v4  ;;  %v670_v45 = vmul.f32 %v1883_v54, %v654_v59 }
  0xea   :  { %v628_v33 = vmul.f32 1.442695, %v602_v63  ;;  %752 = vperm.xlu2 %1393, %v655_v12   ;;  %v671_v6 = vmul.f32 %v1886_v55, %v655_v12  ;;  %v664_v52 = vmul.f32 %v1852_v47, %v2299_v43  ;;  %v2598_v55 = vld [vmem:[#allocation19_spill] sm:$0xff]  ;;  %v665_v54 = vmul.f32 %v1855_v48, %v2319_v10  ;;  %v2403_v48 = vpop.permute.xlu2 %1395  ;;  %v2411_v10 = vpop.permute.xlu0 %1401 }
  0xeb   :  { %v1490_v16 = vpop.eup %1489  ;;  %v1415_v39 = vpack.i.bf16 %v2598_v55, %v2223_v26  ;;  %v662_v5 = vmul.f32 %v1890_v56, %v2253_v15  ;;  %v663_v47 = vmul.f32 %v1895_v58, %v2334_v44  ;;  %v2600_v26 = vld [vmem:[#allocation18_spill] sm:$0xff]  ;;  %v2601_v56 = vld [vmem:[#allocation20_spill] sm:$0xff]  ;;  %vm1114_vm3 = vcmask 0  }
  0xec   :  { %1493 = vpow2.f32 %v628_v33  ;;  %v651_v41 = vmul.f32 %v1490_v16, %v587_v17  ;;  %v1425_v43 = vpack.i.bf16 %v2600_v26, %v2138_v14  ;;  %v656_v58 = vmul.f32 %v2600_v26, %v2145_v24 }
  0xed   :  { %v1492_v9 = vpop.eup %1491 }
  0xee   :  { %732 = vperm.xlu1 %1387, %v651_v41   ;;  %v653_v1 = vmul.f32 %v1492_v9, %v589_v53  ;;  %v667_v22 = vmul.f32 %v1835_v8, %v651_v41  ;;  %v2599_v8 = vld [vmem:[#allocation17_spill] sm:$0xff] }
  0xef   :  { %v1420_v59 = vpack.i.bf16 %v2599_v8, %v2171_v23  ;;  %v658_v23 = vmul.f32 %v2599_v8, %v2601_v56 }
  0xf0   :  { %742 = vperm.xlu0 %1399, %v653_v1   ;;  %v669_v21 = vmul.f32 %v1927_v7, %v653_v1  ;;  %v660_v7 = vmul.f32 %v2598_v55, %v2183_v34  ;;  %v1390_v34 = vpop.permute.xlu1 %1389 }
  0xf1   :  { %v1392_v33 = vunpack.i.h.bf16 %v1390_v34  ;;  %v1391_v16 = vunpack.i.l.bf16 %v1390_v34 }
  0xf2   :  { %v1494_v57 = vpop.eup %1493  ;;  %v2419_v50 = vpop.permute.xlu0 %1406 }
  0xf3   :  { %v650_v11 = vmul.f32 %v1494_v57, %v586_v35  ;;  %v1398_v35 = vunpack.i.h.bf16 %v2403_v48  ;;  %v1408_v34 = vunpack.i.l.bf16 %v2419_v50 }
  0xf5   :  { %727 = vperm.xlu2 %1393, %v650_v11   ;;  %v666_v18 = vmul.f32 %v2597_v37, %v650_v11  ;;  %v2602_v37 = vld [vmem:[#allocation14_spill] sm:$0xff] }
  0xf6   :  { %851 = vperm.xlu1 %1387, %v671_v6   ;;  %vm771_vm0 = vcmp.eq.s32.totalorder %v2602_v37, 1  ;;  %vm672_vm5 = vcmp.eq.s32.totalorder %v2602_v37, 0  ;;  %vm886_vm6 = vcmp.eq.s32.totalorder %v2602_v37, 2  ;;  %vm1001_vm7 = vcmp.eq.s32.totalorder %v2602_v37, 3 }
  0xf7   :  { %v2436_v27 = vsel %vm771_vm0, 1.0, %v2584_v61  ;;  %v2439_v63 = vsel %vm672_vm5, 1.0, %v2584_v61  ;;  %v2447_v53 = vsel %vm886_vm6, 1.0, %v2584_v61 }
  0xf8   :  { %836 = vperm.xlu0 %1399, %v668_v25   ;;  %v983_v1 = vmul.f32 %v1392_v33, %v2447_v53  ;;  %v984_v57 = vmul.f32 %v1391_v16, %v2447_v53  ;;  %v978_v33 = vmul.f32 %v1408_v34, %v2447_v53 }
  0xfa   :  { %v2425_v29 = vpop.permute.xlu0 %1411 }
  0xfd   :  { %846 = vperm.xlu2 %1393, %v670_v45  }
  0xfe   :  { %826 = vperm.xlu1 %1387, %v666_v18  }
 0x100   :  { %831 = vperm.xlu0 %1399, %v667_v22  }
 0x105   :  { %841 = vperm.xlu2 %1393, %v669_v21  }
 0x106   :  { %816 = vperm.xlu1 %1387, %v664_v52  }
 0x108   :  { %1416 = vperm.xlu0 %1399, %v1415_v39  }
 0x10d   :  { %821 = vperm.xlu2 %1393, %v665_v54   ;;  %v2460_v54 = vsel %vm1001_vm7, 1.0, %v2584_v61 }
 0x10e   :  { %806 = vperm.xlu1 %1387, %v662_v5   ;;  %v981_v5 = vmul.f32 %v1398_v35, %v2447_v53 }
 0x110   :  { %1421 = vperm.xlu0 %1399, %v1420_v59  }
 0x115   :  { %811 = vperm.xlu2 %1393, %v663_v47   ;;  %v1404_v47 = vunpack.i.h.bf16 %v2411_v10 }
 0x116   :  { %796 = vperm.xlu1 %1387, %v660_v7   ;;  %v1403_v7 = vunpack.i.l.bf16 %v2411_v10 }
 0x117   :  { %v979_v37 = vmul.f32 %v1404_v47, %v2447_v53 }
 0x118   :  { %1426 = vperm.xlu0 %1399, %v1425_v43  }
 0x11d   :  { %801 = vperm.xlu2 %1393, %v661_v42   ;;  %v2407_v15 = vpop.permute.xlu2 %682 }
 0x11e   :  { %786 = vperm.xlu1 %1387, %v658_v23  }
 0x122   :  { %v2429_v13 = vpop.permute.xlu0 %687 }
 0x125   :  { %791 = vperm.xlu2 %1393, %v659_v32   ;;  %v2413_v14 = vpop.permute.xlu2 %692  ;;  %v1397_v32 = vunpack.i.l.bf16 %v2403_v48 }
 0x126   :  { %776 = vperm.xlu1 %1387, %v656_v58  }
 0x127   :  { %v982_v22 = vmul.f32 %v1397_v32, %v2447_v53 }
 0x129   :  { %v2415_v44 = vpop.permute.xlu1 %677 }
 0x12d   :  { %781 = vperm.xlu2 %1393, %v657_v28  }
 0x12f   :  { %v2417_v19 = vpop.permute.xlu2 %702 }
 0x131   :  { %v2421_v49 = vpop.permute.xlu1 %697 }
 0x139   :  { %v2423_v3 = vpop.permute.xlu2 %712 }
 0x141   :  { %v2427_v20 = vpop.permute.xlu1 %707 }
 0x144   :  { %v753_v24 = vpop.permute.xlu2 %752 }
 0x145   :  { %v770_v28 = vmul.f32 %v2439_v63, %v753_v24 }
 0x149   :  { %v2431_v0 = vpop.permute.xlu1 %717 }
 0x14e   :  { %v723_v60 = vpop.permute.xlu0 %722 }
 0x14f   :  { %v728_v4 = vpop.permute.xlu2 %727  ;;  %v764_v24 = vmul.f32 %v2439_v63, %v723_v60 }
 0x150   :  { %v765_v48 = vmul.f32 %v2439_v63, %v728_v4  ;;  %v90_v4 = vld [vmem:[#allocation5 + $0x8] sm:$0xff] }
 0x151   :  { %1135 = vmatmul.f32.vlgmr.msra.gmra.mxu1 %v90_v4 }
 0x156   :  { %v748_v38 = vpop.permute.xlu0 %747 }
 0x157   :  { %v847_v36 = vpop.permute.xlu2 %846  ;;  %v769_v12 = vmul.f32 %v2439_v63, %v748_v38 }
 0x158   :  { %v738_v46 = vpop.permute.xlu1 %737  ;;  %v868_v40 = vmul.f32 %v2436_v27, %v847_v36 }
 0x159   :  { %v767_v6 = vmul.f32 %v2439_v63, %v738_v46 }
 0x15a   :  { %v884_v41 = vadd.f32 %v868_v40, %v769_v12  ;;  %v980_v40 = vmul.f32 %v1403_v7, %v2447_v53 }
 0x15c   :  { %v999_v39 = vadd.f32 %v983_v1, %v884_v41 }
 0x15e   :  { %v1018_v23 = vadd.f32 %v2460_v54, %v999_v39  ;;  %v760_v39 = vmul.f32 %v2439_v63, %v2417_v19 }
 0x15f   :  { %v842_v2 = vpop.permute.xlu2 %841 }
 0x160   :  { %v733_v62 = vpop.permute.xlu1 %732  ;;  %v867_v31 = vmul.f32 %v2436_v27, %v842_v2 }
 0x161   :  { %v766_v46 = vmul.f32 %v2439_v63, %v733_v62  ;;  %v1409_v62 = vunpack.i.h.bf16 %v2419_v50 }
 0x162   :  { %v743_v30 = vpop.permute.xlu0 %742 }
 0x163   :  { %v768_v51 = vmul.f32 %v2439_v63, %v743_v30 }
 0x165   :  { %v883_v25 = vadd.f32 %v867_v31, %v768_v51  ;;  %v1413_v31 = vunpack.i.l.bf16 %v2425_v29  ;;  %v762_v51 = vmul.f32 %v2439_v63, %v2423_v3 }
 0x167   :  { %v822_v17 = vpop.permute.xlu2 %821  ;;  %v998_v59 = vadd.f32 %v982_v22, %v883_v25 }
 0x168   :  { %v852_v42 = vpop.permute.xlu1 %851  ;;  %v863_v26 = vmul.f32 %v2436_v27, %v822_v17 }
 0x169   :  { %v869_v9 = vmul.f32 %v2436_v27, %v852_v42  ;;  %v1017_v2 = vadd.f32 %v2460_v54, %v998_v59 }
 0x16a   :  { %v837_v11 = vpop.permute.xlu0 %836  ;;  %v879_v30 = vadd.f32 %v863_v26, %v764_v24  ;;  %v95_v24 = vld [vmem:[#allocation5 + $0x30] sm:$0xff] }
 0x16b   :  { %v885_v45 = vadd.f32 %v869_v9, %v770_v28  ;;  %v866_v18 = vmul.f32 %v2436_v27, %v837_v11  ;;  %v763_v9 = vmul.f32 %v2439_v63, %v2431_v0  ;;  %v977_v11 = vmul.f32 %v1409_v62, %v2447_v53  ;;  %1150 = vmatmul.f32.vlgmr.msra.gmra.mxu2 %v95_v24  ;;  %v92_v62 = vld [vmem:[#allocation5 + $0x18] sm:$0xff]  ;;  %v102_v24 = vld [vmem:[#allocation5 + $0x68] sm:$0xff] }
 0x16c   :  { %v994_v41 = vadd.f32 %v978_v33, %v879_v30 }
 0x16d   :  { %v882_v21 = vadd.f32 %v866_v18, %v767_v6  ;;  %v1000_v55 = vadd.f32 %v984_v57, %v885_v45  ;;  %v976_v6 = vmul.f32 %v1413_v31, %v2447_v53  ;;  %v91_v45 = vld [vmem:[#allocation5 + $0x10] sm:$0xff] }
 0x16e   :  { %v1013_v18 = vadd.f32 %v2460_v54, %v994_v41  ;;  %1138 = vmatmul.f32.gmra.mxu1 %v91_v45  ;;  %v757_v41 = vmul.f32 %v2439_v63, %v2429_v13  ;;  %v97_v45 = vld [vmem:[#allocation5 + $0x40] sm:$0xff] }
 0x16f   :  { %v812_v52 = vpop.permute.xlu2 %811  ;;  %v1019_v8 = vadd.f32 %v2460_v54, %v1000_v55  ;;  %v997_v58 = vadd.f32 %v981_v5, %v882_v21  ;;  %v1414_v55 = vunpack.i.h.bf16 %v2425_v29 }
 0x170   :  { %v827_v43 = vpop.permute.xlu1 %826  ;;  %v861_v12 = vmul.f32 %v2436_v27, %v812_v52 }
 0x171   :  { %v864_v56 = vmul.f32 %v2436_v27, %v827_v43  ;;  %1026 = vmatpush.msra.mxu0 %v1019_v8  ;;  %v1016_v60 = vadd.f32 %v2460_v54, %v997_v58  ;;  %v761_v8 = vmul.f32 %v2439_v63, %v2427_v20 }
 0x172   :  { %v832_v36 = vpop.permute.xlu0 %831  ;;  %v877_v35 = vadd.f32 %v861_v12, %v762_v51  ;;  %v96_v51 = vld [vmem:[#allocation5 + $0x38] sm:$0xff] }
 0x173   :  { %v880_v38 = vadd.f32 %v864_v56, %v765_v48  ;;  %v865_v10 = vmul.f32 %v2436_v27, %v832_v36  ;;  %1027 = vmatpush.msra.mxu0 %v1018_v23  ;;  %v975_v56 = vmul.f32 %v1414_v55, %v2447_v53  ;;  %v758_v36 = vmul.f32 %v2439_v63, %v2413_v14 }
 0x174   :  { %v992_v52 = vadd.f32 %v976_v6, %v877_v35  ;;  %1153 = vmatmul.f32.gmra.mxu2 %v96_v51 }
 0x175   :  { %v881_v17 = vadd.f32 %v865_v10, %v766_v46  ;;  %1028 = vmatpush.msra.mxu0 %v1017_v2  ;;  %v995_v32 = vadd.f32 %v979_v37, %v880_v38  ;;  %v759_v10 = vmul.f32 %v2439_v63, %v2421_v49 }
 0x176   :  { %v1011_v48 = vadd.f32 %v2460_v54, %v992_v52  ;;  %1141 = vmatmul.f32.gmra.mxu1 %v92_v62  ;;  %v1516_v62 = vld [vmem:[#allocation2] sm:$0xff] }
 0x177   :  { %v802_v16 = vpop.permute.xlu2 %801  ;;  %1029 = vmatpush.msra.mxu0 %v1016_v60  ;;  %v996_v42 = vadd.f32 %v980_v40, %v881_v17  ;;  %v1014_v3 = vadd.f32 %v2460_v54, %v995_v32 }
 0x178   :  { %v817_v28 = vpop.permute.xlu1 %816  ;;  %v859_v0 = vmul.f32 %v2436_v27, %v802_v16 }
 0x179   :  { %v862_v1 = vmul.f32 %v2436_v27, %v817_v28  ;;  %v1015_v50 = vadd.f32 %v2460_v54, %v996_v42  ;;  %v756_v42 = vmul.f32 %v2439_v63, %v2407_v15  ;;  %v93_v15 = vld [vmem:[#allocation5 + $0x20] sm:$0xff] }
 0x17a   :  { %v1417_v57 = vpop.permute.xlu0 %1416  ;;  %v875_v7 = vadd.f32 %v859_v0, %v760_v39 }
 0x17b   :  { %v878_v25 = vadd.f32 %v862_v1, %v763_v9  ;;  %1030 = vmatpush.msra.mxu0 %v1015_v50  ;;  %v1418_v22 = vunpack.i.l.bf16 %v1417_v57  ;;  %v1419_v46 = vunpack.i.h.bf16 %v1417_v57 }
 0x17c   :  { %1156 = vmatmul.f32.gmra.mxu2 %v97_v45 }
 0x17d   :  { %1031 = vmatpush.msra.mxu0 %v1014_v3  ;;  %v993_v21 = vadd.f32 %v977_v11, %v878_v25  ;;  %v974_v26 = vmul.f32 %v1418_v22, %v2447_v53  ;;  %v973_v60 = vmul.f32 %v1419_v46, %v2447_v53  ;;  %v755_v22 = vmul.f32 %v2439_v63, %v2415_v44  ;;  %v100_v44 = vld [vmem:[#allocation5 + $0x58] sm:$0xff]  ;;  %v1507_v46 = vld [vmem:[#allocation2 + $0x48] sm:$0xff] }
 0x17e   :  { %1144 = vmatmul.f32.gmra.mxu1 %v93_v15  ;;  %1165 = vmatmul.f32.vlgmr.msra.gmra.mxu3 %v100_v44 }
 0x17f   :  { %1032 = vmatpush.msra.mxu0 %v1013_v18  ;;  %v1012_v5 = vadd.f32 %v2460_v54, %v993_v21  ;;  %v792_v47 = vpop.permute.xlu2 %791  ;;  %v990_v20 = vadd.f32 %v974_v26, %v875_v7  ;;  %v98_v26 = vld [vmem:[#allocation5 + $0x48] sm:$0xff] }
 0x180   :  { %v807_v59 = vpop.permute.xlu1 %806  ;;  %v857_v23 = vmul.f32 %v2436_v27, %v792_v47  ;;  %v94_v47 = vld [vmem:[#allocation5 + $0x28] sm:$0xff] }
 0x181   :  { %v860_v43 = vmul.f32 %v2436_v27, %v807_v59  ;;  %1033 = vmatpush.msra.mxu0 %v1012_v5  ;;  %v1009_v40 = vadd.f32 %v2460_v54, %v990_v20  ;;  %v2603_v5 = vlaneseq  ;;  %v1430_v59 = vld [vmem:[%s2554_s3] ss:$0 sm:$0xff]  ;;  %v1505_v20 = vld [vmem:[#allocation2 + $0x58] sm:$0xff]  ;;  %s1628_s3 = smov [#allocation7]  }
 0x182   :  { %v1422_v29 = vpop.permute.xlu0 %1421  ;;  %v873_v4 = vadd.f32 %v857_v23, %v758_v36  ;;  %v1502_v23 = vld [vmem:[#allocation2 + $0x70] sm:$0xff]  ;;  %s1259_s29 = sshll.u32 %s1628_s3, 4  ;;  %s1260_s29 = int_to_ptr.vmem [resolvable:$true] %s1259_s29 }
 0x183   :  { %v876_v19 = vadd.f32 %v860_v43, %v761_v8  ;;  %1034 = vmatpush.msra.mxu0 %v1011_v48  ;;  %v1423_v58 = vunpack.i.l.bf16 %v1422_v29  ;;  %v1424_v32 = vunpack.i.h.bf16 %v1422_v29  ;;  %v1021_v8 = vshrl.u32 %v2603_v5, 7  ;;  %v1501_v29 = vld [vmem:[#allocation2 + $0x78] sm:$0xff]  ;;  %v1506_v36 = vld [vmem:[#allocation2 + $0x50] sm:$0xff] }
 0x184   :  { %1159 = vmatmul.f32.gmra.mxu2 %v98_v26  ;;  %v1627_v48 = vmov 1.0  }
 0x185   :  { %v991_v34 = vadd.f32 %v975_v56, %v876_v19  ;;  %v972_v37 = vmul.f32 %v1423_v58, %v2447_v53  ;;  %v971_v11 = vmul.f32 %v1424_v32, %v2447_v53  ;;  %vm1023_vm8 = vcmp.eq.s32.totalorder %v1021_v8, %v1430_v59  ;;  %v99_v56 = vld [vmem:[#allocation5 + $0x50] sm:$0xff]  ;;  %v101_v19 = vld [vmem:[#allocation5 + $0x60] sm:$0xff]  ;;  %v1503_v58 = vld [vmem:[#allocation2 + $0x68] sm:$0xff] }
 0x186   :  { %1147 = vmatmul.f32.gmra.mxu1 %v94_v47  ;;  %1168 = vmatmul.f32.gmra.mxu3 %v101_v19 }
 0x187   :  { %v1010_v38 = vadd.f32 %v2460_v54, %v991_v34  ;;  %v782_v12 = vpop.permute.xlu2 %781  ;;  %v988_v31 = vadd.f32 %v972_v37, %v873_v4  ;;  %v1504_v34 = vld [vmem:[#allocation2 + $0x60] sm:$0xff]  ;;  %v1510_v4 = vld [vmem:[#allocation2 + $0x30] sm:$0xff]  ;;  %v1511_v37 = vld [vmem:[#allocation2 + $0x28] sm:$0xff] }
 0x188   :  { %v797_v2 = vpop.permute.xlu1 %796  ;;  %v855_v33 = vmul.f32 %v2436_v27, %v782_v12  ;;  %v104_v12 = vld [vmem:[#allocation5 + $0x78] sm:$0xff] }
 0x189   :  { %v858_v30 = vmul.f32 %v2436_v27, %v797_v2  ;;  %1035 = vmatpush.msra.mxu0 %v1010_v38  ;;  %v1007_v57 = vadd.f32 %v2460_v54, %v988_v31  ;;  %v1508_v38 = vld [vmem:[#allocation2 + $0x40] sm:$0xff]  ;;  %v103_v2 = vld [vmem:[#allocation5 + $0x70] sm:$0xff] }
 0x18a   :  { %v1427_v17 = vpop.permute.xlu0 %1426  ;;  %v871_v35 = vadd.f32 %v855_v33, %v756_v42 }
 0x18b   :  { %v874_v14 = vadd.f32 %v858_v30, %v759_v10  ;;  %1036 = vmatpush.msra.mxu0 %v1009_v40  ;;  %v1428_v49 = vunpack.i.l.bf16 %v1427_v17  ;;  %v1429_v13 = vunpack.i.h.bf16 %v1427_v17  ;;  %v1509_v10 = vld [vmem:[#allocation2 + $0x38] sm:$0xff]  ;;  %v1512_v30 = vld [vmem:[#allocation2 + $0x20] sm:$0xff]  ;;  %v1514_v17 = vld [vmem:[#allocation2 + $0x10] sm:$0xff] }
 0x18c   :  { %1162 = vmatmul.f32.gmra.mxu2 %v99_v56  ;;  %v1513_v40 = vld [vmem:[#allocation2 + $0x18] sm:$0xff] }
 0x18d   :  { %v989_v16 = vadd.f32 %v973_v60, %v874_v14  ;;  %v970_v1 = vmul.f32 %v1428_v49, %v2447_v53  ;;  %v969_v55 = vmul.f32 %v1429_v13, %v2447_v53  ;;  %v1515_v60 = vld [vmem:[#allocation2 + $0x8] sm:$0xff]  ;;  %v89_v14 = vld [vmem:[#allocation5] sm:$0xff] }
 0x18e   :  { %1171 = vmatmul.f32.gmra.mxu3 %v102_v24 }
 0x18f   :  { %v1008_v28 = vadd.f32 %v2460_v54, %v989_v16  ;;  %v986_v3 = vadd.f32 %v970_v1, %v871_v35 }
 0x190   :  { %v787_v9 = vpop.permute.xlu1 %786 }
 0x191   :  { %v856_v50 = vmul.f32 %v2436_v27, %v787_v9  ;;  %1037 = vmatpush.msra.mxu0 %v1008_v28  ;;  %v1005_v52 = vadd.f32 %v2460_v54, %v986_v3 }
 0x193   :  { %v872_v6 = vadd.f32 %v856_v50, %v757_v41  ;;  %1038 = vmatpush.msra.mxu0 %v1007_v57 }
 0x195   :  { %v987_v25 = vadd.f32 %v971_v11, %v872_v6 }
 0x196   :  { %1174 = vmatmul.f32.gmra.mxu3 %v103_v2 }
 0x197   :  { %v1006_v18 = vadd.f32 %v2460_v54, %v987_v25 }
 0x198   :  { %v777_v0 = vpop.permute.xlu1 %776 }
 0x199   :  { %v854_v21 = vmul.f32 %v2436_v27, %v777_v0  ;;  %1039 = vmatpush.msra.mxu0 %v1006_v18 }
 0x19b   :  { %v870_v39 = vadd.f32 %v854_v21, %v755_v22  ;;  %1040 = vmatpush.msra.mxu0 %v1005_v52 }
 0x19d   :  { %v985_v7 = vadd.f32 %v969_v55, %v870_v39 }
 0x19e   :  { %1177 = vmatmul.f32.gmra.mxu3 %v104_v12 }
 0x19f   :  { %v1004_v43 = vadd.f32 %v2460_v54, %v985_v7 }
 0x1a1   :  { %1041 = vmatpush.msra.mxu0 %v1004_v43 }
 0x1a2   :  { %1328 = vmatmul.msk.f32.vlgmr.msra.gmra.mxu0 %vm1023_vm8, %v1627_v48 }
 0x1a3   :  { %1116 = vmatpush.msrb.mxu0 %v1501_v29 }
 0x1a5   :  { %1117 = vmatpush.msrb.mxu0 %v1502_v23 }
 0x1a7   :  { %1118 = vmatpush.msrb.mxu0 %v1503_v58 }
 0x1a9   :  { %1119 = vmatpush.msrb.mxu0 %v1504_v34 }
 0x1ab   :  { %1120 = vmatpush.msrb.mxu0 %v1505_v20 }
 0x1ad   :  { %1121 = vmatpush.msrb.mxu0 %v1506_v36 }
 0x1af   :  { %1122 = vmatpush.msrb.mxu0 %v1507_v46 }
 0x1b1   :  { %1123 = vmatpush.msrb.mxu0 %v1508_v38 }
 0x1b3   :  { %1124 = vmatpush.msrb.mxu0 %v1509_v10 }
 0x1b5   :  { %1125 = vmatpush.msrb.mxu0 %v1510_v4 }
 0x1b7   :  { %1126 = vmatpush.msrb.mxu0 %v1511_v37 }
 0x1b9   :  { %1127 = vmatpush.msrb.mxu0 %v1512_v30 }
 0x1bb   :  { %1128 = vmatpush.msrb.mxu0 %v1513_v40 }
 0x1bd   :  { %1129 = vmatpush.msrb.mxu0 %v1514_v17 }
 0x1bf   :  { %1130 = vmatpush.msrb.mxu0 %v1515_v60 }
 0x1c1   :  { %1131 = vmatpush.msrb.mxu0 %v1516_v62 }
 0x1c2   :  { %1132 = vmatmul.f32.vlgmr.msrb.gmra.mxu0 %v89_v14 }
 0x1ce   :  { %v1136_v33 = vpop.f32.mrf.mxu1 }
 0x1cf   :  { %v1182_v49 = vand.u32 2147483647, %v1136_v33 }
 0x1d1   :  { %1199 = vadd.xlane.f32.xlu2 %v1182_v49 }
 0x1eb   :  { %v1139_v16 = vpop.f32.mrf.mxu1 }
 0x1ec   :  { %v1183_v31 = vand.u32 2147483647, %v1139_v16 }
 0x1ee   :  { %1201 = vadd.xlane.f32.xlu1 %v1183_v31  ;;  %v1151_v28 = vpop.f32.mrf.mxu2 }
 0x1ef   :  { %v1187_v59 = vand.u32 2147483647, %v1151_v28 }
 0x1f3   :  { %v1142_v51 = vpop.f32.mrf.mxu1 }
 0x1f4   :  { %v1184_v57 = vand.u32 2147483647, %v1142_v51 }
 0x1f7   :  { %v1154_v41 = vpop.f32.mrf.mxu2 }
 0x1f8   :  { %v1188_v3 = vand.u32 2147483647, %v1154_v41 }
 0x1fb   :  { %v1145_v42 = vpop.f32.mrf.mxu1 }
 0x1fc   :  { %v1185_v32 = vand.u32 2147483647, %v1145_v42 }
 0x1fe   :  { %1205 = vadd.xlane.f32.xlu0 %v1185_v32 }
 0x1ff   :  { %v1157_v6 = vpop.f32.mrf.mxu2 }
 0x201   :  { %v1166_v50 = vpop.f32.mrf.mxu3 }
 0x202   :  { %v1192_v7 = vand.u32 2147483647, %v1166_v50 }
 0x203   :  { %v1148_v25 = vpop.f32.mrf.mxu1 }
 0x204   :  { %v1186_v45 = vand.u32 2147483647, %v1148_v25 }
 0x207   :  { %v1160_v13 = vpop.f32.mrf.mxu2 }
 0x208   :  { %v1190_v0 = vand.u32 2147483647, %v1160_v13 }
 0x209   :  { %v1169_v15 = vpop.f32.mrf.mxu3 }
 0x20f   :  { %v1163_v22 = vpop.f32.mrf.mxu2 }
 0x210   :  { %v1191_v21 = vand.u32 2147483647, %v1163_v22 }
 0x211   :  { %v1172_v18 = vpop.f32.mrf.mxu3 }
 0x212   :  { %v1194_v5 = vand.u32 2147483647, %v1172_v18 }
 0x21f   :  { %v1043_v9 = vpop.f32.mrf.mxu0 }
 0x220   :  { %v1046_v35 = vmul.f32 %v2439_v63, %v1043_v9  ;;  %v1055_v1 = vmul.f32 %v2460_v54, %v1043_v9  ;;  %v1052_v11 = vmul.f32 %v2447_v53, %v1043_v9  ;;  %v1189_v63 = vand.u32 2147483647, %v1157_v6  ;;  %v1175_v54 = vpop.f32.mrf.mxu3 }
 0x221   :  { %v1193_v53 = vand.u32 2147483647, %v1169_v15  ;;  %v1049_v47 = vmul.f32 %v2436_v27, %v1043_v9  ;;  %v1195_v26 = vand.u32 2147483647, %v1175_v54 }
 0x222   :  { %1047 = vadd.xlane.f32.xlu1 %v1046_v35  ;;  %1056 = vadd.xlane.f32.xlu2 %v1055_v1 }
 0x228   :  { %v1178_v39 = vpop.f32.mrf.mxu3 }
 0x229   :  { %v1196_v8 = vand.u32 2147483647, %v1178_v39 }
 0x22a   :  { %1053 = vadd.xlane.f32.xlu1 %v1052_v11  ;;  %1203 = vadd.xlane.f32.xlu2 %v1184_v57 }
 0x232   :  { %1207 = vadd.xlane.f32.xlu2 %v1186_v45  ;;  %1211 = vadd.xlane.f32.xlu1 %v1188_v3 }
 0x23a   :  { %1213 = vadd.xlane.f32.xlu2 %v1189_v63  ;;  %1215 = vadd.xlane.f32.xlu1 %v1190_v0 }
 0x23f   :  { %v1133_v52 = vpop.f32.mrf.mxu0 }
 0x240   :  { %v1181_v55 = vand.u32 2147483647, %v1133_v52 }
 0x242   :  { %1197 = vadd.xlane.f32.xlu0 %v1181_v55  ;;  %1217 = vadd.xlane.f32.xlu2 %v1191_v21 }
 0x243   :  { %1221 = vadd.xlane.f32.xlu1 %v1193_v53 }
 0x244   :  { %v1200_v43 = vpop.xlane.xlu2 %1199 }
 0x24a   :  { %1209 = vadd.xlane.f32.xlu0 %v1187_v59  ;;  %1223 = vadd.xlane.f32.xlu2 %v1194_v5 }
 0x24b   :  { %1227 = vadd.xlane.f32.xlu1 %v1196_v8 }
 0x252   :  { %1050 = vadd.xlane.f32.xlu0 %v1049_v47 }
 0x25a   :  { %1219 = vadd.xlane.f32.xlu0 %v1192_v7 }
 0x261   :  { %v1202_v44 = vpop.xlane.xlu1 %1201 }
 0x262   :  { %1225 = vadd.xlane.f32.xlu0 %v1195_v26 }
 0x271   :  { %v1206_v36 = vpop.xlane.xlu0 %1205 }
 0x295   :  { %v1048_v48 = vpop.xlane.xlu1 %1047  ;;  %v1057_v29 = vpop.xlane.xlu2 %1056 }
 0x296   :  { %v1058_v56 = vsub.f32 6.0, %v1057_v29 }
 0x298   :  { %v1059_v19 = vmul.f32 0.3, %v1058_v56 }
 0x29a   :  { %v1060_v58 = vadd.f32 %v1059_v19, %v1048_v48 }
 0x29c   :  { %v1061_v20 = vadd.f32 1e-08, %v1060_v58 }
 0x29d   :  { %v1054_v23 = vpop.xlane.xlu1 %1053  ;;  %v1204_v46 = vpop.xlane.xlu2 %1203 }
 0x29e   :  { %vm1062_vm9 = vcmp.gt.f32.partialorder %v1054_v23, 0.0  ;;  %1495 = vrcp.f32 %v1061_v20  ;;  %vm1068_vm10 = vweird.f32 %v1061_v20  ;;  %v1074_v31 = vand.u32 2147483648, %v1061_v20 }
 0x29f   :  { %v1329_v34 = vsel %vm1062_vm9, 1.0, %v2584_v61  ;;  %v1072_v32 = vand.u32 2147483647, %v1061_v20 }
 0x2a0   :  { %v1084_v24 = vrot.slane %v1329_v34, 4  ;;  %v1075_v35 = vor.u32 1.1754944e-38, %v1074_v31 }
 0x2a1   :  { %vm1073_vm13 = vcmp.eq.f32.partialorder %v1072_v32, 8.507059e+37 }
 0x2a2   :  { %v1085_v27 = vadd.f32 %v1329_v34, %v1084_v24 }
 0x2a4   :  { %v1496_v38 = vpop.eup %1495  ;;  %v1086_v10 = vrot.slane %v1085_v27, 2 }
 0x2a5   :  { %v1064_v2 = vmul.f32 %v1496_v38, %v1061_v20  ;;  %v1208_v37 = vpop.xlane.xlu2 %1207  ;;  %v1212_v14 = vpop.xlane.xlu1 %1211  ;;  %vm1069_vm11 = vweird.f32 %v1496_v38 }
 0x2a6   :  { %v1087_v4 = vadd.f32 %v1086_v10, %v1085_v27  ;;  %vm1070_vm12 = vmor %vm1068_vm10, %vm1069_vm11 }
 0x2a7   :  { %v1065_v12 = vsub.f32 1.0, %v1064_v2 }
 0x2a8   :  { %v1088_v17 = vrot.slane %v1087_v4, 1 }
 0x2a9   :  { %v1066_v33 = vmul.f32 %v1496_v38, %v1065_v12 }
 0x2aa   :  { %v2540_v61 = vadd.f32 %v1088_v17, %v1087_v4 }
 0x2ab   :  { %v1067_v42 = vadd.f32 %v1496_v38, %v1066_v33 }
 0x2ac   :  { %v1097_v28 = vmax.f32 %v2540_v61, 1.0  ;;  %vm1096_vm4 = vcmp.gt.f32.partialorder %v2540_v61, 0.0 }
 0x2ad   :  { %v1214_v41 = vpop.xlane.xlu2 %1213  ;;  %v1071_v50 = vsel %vm1070_vm12, %v1496_v38, %v1067_v42  ;;  %v1216_v57 = vpop.xlane.xlu1 %1215 }
 0x2ae   :  { %1497 = vrcp.f32 %v1097_v28  ;;  %v1076_v15 = vsel %vm1073_vm13, %v1075_v35, %v1071_v50  ;;  %vm1103_vm14 = vweird.f32 %v1097_v28  ;;  %v1109_v23 = vand.u32 2147483648, %v1097_v28 }
 0x2af   :  { %v1107_v20 = vand.u32 2147483647, %v1097_v28 }
 0x2b1   :  { %vm1108_vm2 = vcmp.eq.f32.partialorder %v1107_v20, 8.507059e+37 }
 0x2b4   :  { %v1498_v13 = vpop.eup %1497 }
 0x2b5   :  { %v1198_v30 = vpop.xlane.xlu0 %1197  ;;  %v1218_v18 = vpop.xlane.xlu2 %1217  ;;  %v1099_v0 = vmul.f32 %v1498_v13, %v1097_v28  ;;  %vm1104_vm15 = vweird.f32 %v1498_v13 }
 0x2b6   :  { %v1229_v40 = vadd.f32 %v1200_v43, %v1198_v30  ;;  %v1222_v54 = vpop.xlane.xlu1 %1221  ;;  %vm1105_vm1 = vmor %vm1103_vm14, %vm1104_vm15 }
 0x2b7   :  { %v1100_v39 = vsub.f32 1.0, %v1099_v0 }
 0x2b8   :  { %v1230_v60 = vadd.f32 %v1229_v40, %v1202_v44 }
 0x2b9   :  { %v1101_v7 = vmul.f32 %v1498_v13, %v1100_v39 }
 0x2ba   :  { %v1231_v62 = vadd.f32 %v1230_v60, %v1204_v46  ;;  %v1110_v46 = vor.u32 1.1754944e-38, %v1109_v23 }
 0x2bb   :  { %v1102_v19 = vadd.f32 %v1498_v13, %v1101_v7 }
 0x2bc   :  { %v1232_v49 = vadd.f32 %v1231_v62, %v1206_v36 }
 0x2bd   :  { %v1210_v16 = vpop.xlane.xlu0 %1209  ;;  %v1224_v8 = vpop.xlane.xlu2 %1223  ;;  %v1106_v36 = vsel %vm1105_vm1, %v1498_v13, %v1102_v19 }
 0x2be   :  { %v1233_v51 = vadd.f32 %v1232_v49, %v1208_v37  ;;  %v1228_v44 = vpop.xlane.xlu1 %1227  ;;  %v1111_v2 = vsel %vm1108_vm2, %v1110_v46, %v1106_v36 }
 0x2c0   :  { %v1234_v9 = vadd.f32 %v1233_v51, %v1210_v16 }
 0x2c2   :  { %v1235_v1 = vadd.f32 %v1234_v9, %v1212_v14 }
 0x2c4   :  { %v1236_v11 = vadd.f32 %v1235_v1, %v1214_v41 }
 0x2c5   :  { %v1051_v6 = vpop.xlane.xlu0 %1050 }
 0x2c6   :  { %v1077_v25 = vmul.f32 %v1076_v15, %v1051_v6  ;;  %v1237_v3 = vadd.f32 %v1236_v11, %v1216_v57 }
 0x2c8   :  { %v1078_v45 = vsel %vm1062_vm9, %v1077_v25, 1.0  ;;  %v1238_v63 = vadd.f32 %v1237_v3, %v1218_v18 }
 0x2c9   :  { %1499 = vlog2.f32 %v1078_v45 }
 0x2cd   :  { %v1220_v22 = vpop.xlane.xlu0 %1219 }
 0x2ce   :  { %v1239_v21 = vadd.f32 %v1238_v63, %v1220_v22 }
 0x2cf   :  { %v1500_v52 = vpop.eup %1499 }
 0x2d0   :  { %v1080_v53 = vmul.f32 0.6931472, %v1500_v52  ;;  %v1240_v55 = vadd.f32 %v1239_v21, %v1222_v54 }
 0x2d2   :  { %v1081_v5 = vsub.f32 0.0, %v1080_v53  ;;  %v1241_v47 = vadd.f32 %v1240_v55, %v1224_v8 }
 0x2d4   :  { %v1090_v59 = vrot.slane %v1081_v5, 4 }
 0x2d5   :  { %v1226_v26 = vpop.xlane.xlu0 %1225 }
 0x2d6   :  { %v1091_v43 = vadd.f32 %v1090_v59, %v1081_v5  ;;  %v1242_v48 = vadd.f32 %v1241_v47, %v1226_v26 }
 0x2d8   :  { %v1092_v29 = vrot.slane %v1091_v43, 2  ;;  %v1243_v56 = vadd.f32 %v1242_v48, %v1228_v44 }
 0x2da   :  { %v1093_v58 = vadd.f32 %v1092_v29, %v1091_v43  ;;  %v1244_v34 = vrot.slane %v1243_v56, 4 }
 0x2dc   :  { %v1094_v24 = vrot.slane %v1093_v58, 1  ;;  %v1245_v27 = vadd.f32 %v1244_v34, %v1243_v56 }
 0x2de   :  { %v1246_v38 = vrot.slane %v1245_v27, 2  ;;  %v1095_v10 = vadd.f32 %v1094_v24, %v1093_v58 }
 0x2e0   :  { %v1247_v4 = vadd.f32 %v1246_v38, %v1245_v27  ;;  %v1112_v37 = vmul.f32 %v1111_v2, %v1095_v10 }
 0x2e2   :  { %v1248_v30 = vrot.slane %v1247_v4, 1  ;;  %v1113_v40 = vsel %vm1096_vm4, %v1112_v37, 0.0 }
 0x2e3   :  { %1115 = vst.msk [vmem:[#allocation7] sm:$0x1] %vm1114_vm3, %v1113_v40 }
 0x2e4   :  { %v1249_v12 = vadd.f32 %v1248_v30, %v1247_v4  ;;  %1264 = dma.vmem_to_hbm [thread:$0]  %s1260_s29, 16, %s1262_s9, [#allocation4]  }
 0x2e6   :  { %v1250_v17 = vmul.f32 0.0009765625, %v1249_v12 }
 0x2e8   :  { %1251 = vst.msk [vmem:[#allocation8] sm:$0x1] %vm1114_vm3, %v1250_v17 }
 0x2e9   :  { %1275 = dma.vmem_to_hbm [thread:$0]  %s1271_s11, 16, %s1273_s1, [#allocation9]  }
 0x2ea   :  { %1617 = dma.done.wait [#allocation4], 16  }
 0x2eb   :  { %1618 = vsyncadd [#allocation4], 4294967280 }
 0x2ec   :  { %1619 = dma.done.wait [#allocation9], 16  }
 0x2ed   :  { %1620 = vsyncadd [#allocation9], 4294967280 }
 0x2ee   :  { %1286 = vsyncpa [#allocation3], 1 }
 0x2ef   :  { %1287 = vsyncpa [#allocation6], 1 }
 0x2f0   :  { %1288 = vsyncpa [#allocation4], 1 }
 0x2f1   :  { %1289 = vsyncpa [#allocation9], 1 }

</bundles_post_ra>
